<compile_context>
chip_gen: v7x
topology: tpu7x:2x2x1
jax: 0.10.0
libtpu: 0.0.40
codegen_flags: <defaults>
</compile_context>

<pallas_src>
import functools

import jax
import jax.numpy as jnp
from jax.experimental import pallas as pl
from jax.experimental.pallas import tpu as pltpu


def _round_up(x, m):
    return (x + m - 1) // m * m


def _ff_kernel(num_layers, tied, ids_ref, table_ref, *refs):
    # refs = [W_1, b_1, ..., W_L, b_L, (W_dec if not tied), b_dec, out]
    out_ref = refs[-1]
    wb = refs[:-1]

    tm = ids_ref.shape[0]
    vpad = table_ref.shape[0]

    # ---- In-kernel embedding gather: one-hot(ids) @ table on the MXU. ------
    ids = ids_ref[...]                                         # (TM, 1) int32
    iota = jax.lax.broadcasted_iota(jnp.int32, (tm, vpad), 1)  # lane-axis iota
    onehot = jnp.where(iota == ids, 1.0, 0.0).astype(jnp.bfloat16)  # exact 0/1
    table = table_ref[...]                                     # (Vp, Ep) bf16
    h = jnp.dot(onehot, table, preferred_element_type=jnp.float32)  # (TM, Ep) f32

    # dropout: identity at inference time.

    # ---- nn.Sequential of Linear layers (no nonlinearity in the module). ---
    for l in range(num_layers):
        w = wb[2 * l][...]                                     # bf16 (in, out)
        b = wb[2 * l + 1][...]                                 # f32  (1, out)
        h = jnp.dot(h.astype(jnp.bfloat16), w,
                    preferred_element_type=jnp.float32) + b

    # ---- Decoder (optionally tied to the embedding table). -----------------
    if tied:
        bd = wb[2 * num_layers][...]                           # (1, Vp) f32
        logits = jax.lax.dot_general(
            h.astype(jnp.bfloat16), table,
            dimension_numbers=(((1,), (1,)), ((), ())),        # h @ table.T
            preferred_element_type=jnp.float32) + bd
    else:
        wd = wb[2 * num_layers][...]                           # (Hp, Vp) bf16
        bd = wb[2 * num_layers + 1][...]                       # (1, Vp) f32
        logits = jnp.dot(h.astype(jnp.bfloat16), wd,
                         preferred_element_type=jnp.float32) + bd

    # ---- Numerically stable log_softmax over the vocab (lane) axis, f32. ---
    m = jnp.max(logits, axis=-1, keepdims=True)
    shifted = logits - m
    lse = jnp.log(jnp.sum(jnp.exp(shifted), axis=-1, keepdims=True))
    out_ref[...] = shifted - lse


def feedforward_forward(x_tokens, params, num_tokens, num_layers,
                        is_tie_weights=False, tm=256):
    """x_tokens: (B, S) int32 token ids -> (B*S, num_tokens) f32 log-probs."""
    B, S = x_tokens.shape
    N = B * S

    enc = params["encoder"]                                    # (V, E) f32
    V, E = enc.shape
    H = params["ff_w"][0].shape[1]

    # Lane-dense padded sizes (multiples of 128 on feature/vocab dims).
    Vp = _round_up(V, 128)
    Ep = _round_up(E, 128)
    Hp = _round_up(H, 128)
    TM = tm
    Np = _round_up(N, TM)

    # Token ids: the only per-row-tile input.
    ids = x_tokens.reshape(-1).astype(jnp.int32)
    ids = jnp.pad(ids, (0, Np - N)).reshape(Np, 1)

    # Embedding table, bf16, resident in VMEM (also decoder weight when tied).
    table = jnp.pad(enc, ((0, Vp - V), (0, Ep - E))).astype(jnp.bfloat16)

    flat_args = [ids, table]
    in_specs = [
        pl.BlockSpec((TM, 1), lambda i: (i, 0)),
        pl.BlockSpec((Vp, Ep), lambda i: (0, 0)),
    ]

    in_dim_pad = Ep
    for l in range(num_layers):
        w = params["ff_w"][l]                                  # (in, H)
        b = params["ff_b"][l]                                  # (1, H)
        in_d = w.shape[0]
        wp = jnp.pad(w, ((0, in_dim_pad - in_d), (0, Hp - H))).astype(jnp.bfloat16)
        bp = jnp.pad(b, ((0, 0), (0, Hp - H))).astype(jnp.float32)
        flat_args += [wp, bp]
        in_specs += [pl.BlockSpec(wp.shape, lambda i: (0, 0)),
                     pl.BlockSpec(bp.shape, lambda i: (0, 0))]
        in_dim_pad = Hp

    # Padded vocab columns get a huge negative bias -> exp() underflows to 0,
    # so the log-sum-exp over the padded vocab equals the real one.
    dec_b = params["dec_b"]                                    # (1, V)
    bdp = jnp.pad(dec_b, ((0, 0), (0, Vp - V)),
                  constant_values=-1e30).astype(jnp.float32)
    if is_tie_weights:
        flat_args += [bdp]
        in_specs += [pl.BlockSpec(bdp.shape, lambda i: (0, 0))]
    else:
        dec_w = params["dec_w"]                                # (H, V)
        wdp = jnp.pad(dec_w, ((0, Hp - H), (0, Vp - V))).astype(jnp.bfloat16)
        flat_args += [wdp, bdp]
        in_specs += [pl.BlockSpec(wdp.shape, lambda i: (0, 0)),
                     pl.BlockSpec(bdp.shape, lambda i: (0, 0))]

    # ---- Cost estimate (helps XLA schedule around the custom call). --------
    flops = 2 * Np * Vp * Ep                                   # one-hot gather
    d_in = Ep
    for _ in range(num_layers):
        flops += 2 * Np * d_in * Hp
        d_in = Hp
    flops += 2 * Np * Hp * Vp                                  # decoder
    bytes_accessed = sum(int(a.size) * a.dtype.itemsize for a in flat_args)
    bytes_accessed += Np * Vp * 4
    cost = pl.CostEstimate(flops=int(flops), transcendentals=int(Np * Vp),
                           bytes_accessed=int(bytes_accessed))

    # ---- Explicit VMEM budget (resident weights + double-buffered tiles). --
    resident = sum(int(a.size) * a.dtype.itemsize for a in flat_args[1:])
    per_tile = 2 * (TM * 4 + TM * Vp * 4)                      # ids + out (x2 bufs)
    interm = 8 * TM * max(Ep, Hp, Vp) * 4                      # live f32 temporaries
    vmem_limit = int(min(100 * 1024 * 1024,
                         max(16 * 1024 * 1024,
                             2 * (2 * resident + per_tile + interm))))

    kernel = functools.partial(_ff_kernel, num_layers, is_tie_weights)
    out = pl.pallas_call(
        kernel,
        grid=(Np // TM,),
        in_specs=in_specs,
        out_specs=pl.BlockSpec((TM, Vp), lambda i: (i, 0)),
        out_shape=jax.ShapeDtypeStruct((Np, Vp), jnp.float32),
        compiler_params=pltpu.CompilerParams(
            dimension_semantics=("parallel",),
            vmem_limit_bytes=vmem_limit),
        cost_estimate=cost,
    )(*flat_args)

    return out[:N, :V]


def init_params(key, num_tokens, num_embeddings, num_hidden, num_layers,
                is_tie_weights):
    """Deterministic synthetic parameter init (mirrors the module's shapes)."""
    init_range = 0.1
    keys = jax.random.split(key, 2 * num_layers + 2)

    enc = jax.random.uniform(keys[0], (num_tokens, num_embeddings),
                             jnp.float32, -init_range, init_range)

    ff_w, ff_b = [], []
    in_dim = num_embeddings
    for l in range(num_layers):
        bound = float(in_dim) ** -0.5   # nn.Linear-style bounded uniform
        w = jax.random.uniform(keys[1 + 2 * l], (in_dim, num_hidden),
                               jnp.float32, -bound, bound)
        b = jax.random.uniform(keys[2 + 2 * l], (1, num_hidden),
                               jnp.float32, -bound, bound)
        ff_w.append(w)
        ff_b.append(b)
        in_dim = num_hidden

    if is_tie_weights:
        if num_hidden != num_embeddings:
            raise ValueError(
                "When using the tied flag, num_hidden must equal num_embeddings")
        dec_w = None      # decoder weight == encoder table; never materialize enc.T
    else:
        dec_w = jax.random.uniform(keys[-1], (num_hidden, num_tokens),
                                   jnp.float32, -init_range, init_range)
    dec_b = jnp.zeros((1, num_tokens), jnp.float32)     # decoder.bias.zero_()

    return {"encoder": enc, "ff_w": ff_w, "ff_b": ff_b,
            "dec_w": dec_w, "dec_b": dec_b}


def _reference_forward(x_tokens, params, num_tokens, num_layers, is_tie_weights):
    """Pure-JAX f32 reference for correctness check."""
    emb = params["encoder"][x_tokens.reshape(-1)]
    h = emb
    for l in range(num_layers):
        h = h @ params["ff_w"][l] + params["ff_b"][l]
    dec_w = params["encoder"].T if is_tie_weights else params["dec_w"]
    logits = h @ dec_w + params["dec_b"]
    return jax.nn.log_softmax(logits, axis=-1).reshape(-1, num_tokens)


if __name__ == "__main__":
    # Lane-dense model dims (multiples of 128) per the performance review.
    num_tokens = 256
    num_embeddings = 128
    num_hidden = 128
    num_layers = 2
    dropout = 0.0          # inference: dropout is identity

    B, S = 4, 100          # N = 400 -> padded to 512 rows (grid of 2 x TM=256)

    key = jax.random.PRNGKey(0)
    pkey, xkey = jax.random.split(key)
    x = jax.random.randint(xkey, (B, S), 0, num_tokens, dtype=jnp.int32)

    for tie in (False, True):
        params = init_params(pkey, num_tokens, num_embeddings, num_hidden,
                             num_layers, tie)
        out = feedforward_forward(x, params, num_tokens, num_layers,
                                  is_tie_weights=tie, tm=256)
        out = jax.block_until_ready(out)

        ref = _reference_forward(x, params, num_tokens, num_layers, tie)
        assert out.shape == (B * S, num_tokens), out.shape
        err = float(jnp.max(jnp.abs(out - ref)))
        # bf16 matmul inputs with f32 accumulation -> loosened tolerance.
        assert err < 2e-2, f"mismatch vs reference (tie={tie}): max|diff|={err}"

    print("KERNEL_OK")
</pallas_src>

<mosaic_0001>
module attributes {stable_mosaic.version = 11 : i64} {
  func.func @_ff_kernel(%arg0: i32, %arg1: memref<256x1xi32, #tpu.memory_space<vmem>>, %arg2: memref<256x128xbf16, #tpu.memory_space<vmem>>, %arg3: memref<128x128xbf16, #tpu.memory_space<vmem>>, %arg4: memref<1x128xf32, #tpu.memory_space<vmem>>, %arg5: memref<128x128xbf16, #tpu.memory_space<vmem>>, %arg6: memref<1x128xf32, #tpu.memory_space<vmem>>, %arg7: memref<128x256xbf16, #tpu.memory_space<vmem>>, %arg8: memref<1x256xf32, #tpu.memory_space<vmem>>, %arg9: memref<256x256xf32, #tpu.memory_space<vmem>>) attributes {dimension_semantics = [#tpu.dimension_semantics<parallel>], iteration_bounds = array<i64: 2>, scalar_prefetch = 0 : i64, scratch_operands = 0 : i64, tpu.core_type = #tpu.core_type<tc>, window_params = [{transform_indices = @transform_0, window_bounds = array<i64: 256, 1>}, {pipeline_mode = #tpu.pipeline_mode<synchronous>, transform_indices = @transform_1, window_bounds = array<i64: 256, 128>}, {pipeline_mode = #tpu.pipeline_mode<synchronous>, transform_indices = @transform_2, window_bounds = array<i64: 128, 128>}, {pipeline_mode = #tpu.pipeline_mode<synchronous>, transform_indices = @transform_3, window_bounds = array<i64: 1, 128>}, {pipeline_mode = #tpu.pipeline_mode<synchronous>, transform_indices = @transform_4, window_bounds = array<i64: 128, 128>}, {pipeline_mode = #tpu.pipeline_mode<synchronous>, transform_indices = @transform_5, window_bounds = array<i64: 1, 128>}, {pipeline_mode = #tpu.pipeline_mode<synchronous>, transform_indices = @transform_6, window_bounds = array<i64: 128, 256>}, {pipeline_mode = #tpu.pipeline_mode<synchronous>, transform_indices = @transform_7, window_bounds = array<i64: 1, 256>}, {transform_indices = @transform_8, window_bounds = array<i64: 256, 256>}]} {
    %c0 = arith.constant 0 : index
    %c0_0 = arith.constant 0 : index
    %0 = vector.load %arg1[%c0, %c0_0] : memref<256x1xi32, #tpu.memory_space<vmem>>, vector<256x1xi32>
    %1 = tpu.iota {dimensions = array<i32: 1>} : vector<256x256xi32>
    %2 = vector.broadcast %0 : vector<256x1xi32> to vector<256x256xi32>
    %3 = arith.cmpi eq, %1, %2 : vector<256x256xi32>
    %cst = arith.constant 1.000000e+00 : f32
    %cst_1 = arith.constant 0.000000e+00 : f32
    %4 = vector.broadcast %cst : f32 to vector<256x256xf32>
    %5 = vector.broadcast %cst_1 : f32 to vector<256x256xf32>
    %6 = arith.select %3, %4, %5 : vector<256x256xi1>, vector<256x256xf32>
    %7 = arith.truncf %6 : vector<256x256xf32> to vector<256x256xbf16>
    %c0_2 = arith.constant 0 : index
    %c0_3 = arith.constant 0 : index
    %8 = vector.load %arg2[%c0_2, %c0_3] : memref<256x128xbf16, #tpu.memory_space<vmem>>, vector<256x128xbf16>
    %cst_4 = arith.constant dense<0.000000e+00> : vector<256x128xf32>
    %9 = tpu.matmul %7, %8, %cst_4 {dimension_numbers = #tpu.dot_dimension_numbers<[1], [0], [0], [1], [0, 0, 1, 1], [], []>} : vector<256x256xbf16>, vector<256x128xbf16>, vector<256x128xf32> -> vector<256x128xf32>
    %c0_5 = arith.constant 0 : index
    %c0_6 = arith.constant 0 : index
    %10 = vector.load %arg3[%c0_5, %c0_6] : memref<128x128xbf16, #tpu.memory_space<vmem>>, vector<128x128xbf16>
    %c0_7 = arith.constant 0 : index
    %c0_8 = arith.constant 0 : index
    %11 = vector.load %arg4[%c0_7, %c0_8] : memref<1x128xf32, #tpu.memory_space<vmem>>, vector<1x128xf32>
    %12 = arith.truncf %9 : vector<256x128xf32> to vector<256x128xbf16>
    %cst_9 = arith.constant dense<0.000000e+00> : vector<256x128xf32>
    %13 = tpu.matmul %12, %10, %cst_9 {dimension_numbers = #tpu.dot_dimension_numbers<[1], [0], [0], [1], [0, 0, 1, 1], [], []>} : vector<256x128xbf16>, vector<128x128xbf16>, vector<256x128xf32> -> vector<256x128xf32>
    %14 = vector.broadcast %11 : vector<1x128xf32> to vector<256x128xf32>
    %15 = arith.addf %13, %14 : vector<256x128xf32>
    %c0_10 = arith.constant 0 : index
    %c0_11 = arith.constant 0 : index
    %16 = vector.load %arg5[%c0_10, %c0_11] : memref<128x128xbf16, #tpu.memory_space<vmem>>, vector<128x128xbf16>
    %c0_12 = arith.constant 0 : index
    %c0_13 = arith.constant 0 : index
    %17 = vector.load %arg6[%c0_12, %c0_13] : memref<1x128xf32, #tpu.memory_space<vmem>>, vector<1x128xf32>
    %18 = arith.truncf %15 : vector<256x128xf32> to vector<256x128xbf16>
    %cst_14 = arith.constant dense<0.000000e+00> : vector<256x128xf32>
    %19 = tpu.matmul %18, %16, %cst_14 {dimension_numbers = #tpu.dot_dimension_numbers<[1], [0], [0], [1], [0, 0, 1, 1], [], []>} : vector<256x128xbf16>, vector<128x128xbf16>, vector<256x128xf32> -> vector<256x128xf32>
    %20 = vector.broadcast %17 : vector<1x128xf32> to vector<256x128xf32>
    %21 = arith.addf %19, %20 : vector<256x128xf32>
    %c0_15 = arith.constant 0 : index
    %c0_16 = arith.constant 0 : index
    %22 = vector.load %arg7[%c0_15, %c0_16] : memref<128x256xbf16, #tpu.memory_space<vmem>>, vector<128x256xbf16>
    %c0_17 = arith.constant 0 : index
    %c0_18 = arith.constant 0 : index
    %23 = vector.load %arg8[%c0_17, %c0_18] : memref<1x256xf32, #tpu.memory_space<vmem>>, vector<1x256xf32>
    %24 = arith.truncf %21 : vector<256x128xf32> to vector<256x128xbf16>
    %cst_19 = arith.constant dense<0.000000e+00> : vector<256x256xf32>
    %25 = tpu.matmul %24, %22, %cst_19 {dimension_numbers = #tpu.dot_dimension_numbers<[1], [0], [0], [1], [0, 0, 1, 1], [], []>} : vector<256x128xbf16>, vector<128x256xbf16>, vector<256x256xf32> -> vector<256x256xf32>
    %26 = vector.broadcast %23 : vector<1x256xf32> to vector<256x256xf32>
    %27 = arith.addf %25, %26 : vector<256x256xf32>
    %cst_20 = arith.constant dense<0xFF800000> : vector<256xf32>
    %28 = vector.multi_reduction <maximumf>, %27, %cst_20 [1] : vector<256x256xf32> to vector<256xf32>
    %29 = vector.shape_cast %28 : vector<256xf32> to vector<256x1xf32>
    %30 = vector.broadcast %29 : vector<256x1xf32> to vector<256x256xf32>
    %31 = arith.subf %27, %30 : vector<256x256xf32>
    %32 = math.exp %31 : vector<256x256xf32>
    %cst_21 = arith.constant dense<0.000000e+00> : vector<256xf32>
    %33 = vector.multi_reduction <add>, %32, %cst_21 [1] : vector<256x256xf32> to vector<256xf32>
    %34 = vector.shape_cast %33 : vector<256xf32> to vector<256x1xf32>
    %35 = math.log %34 : vector<256x1xf32>
    %36 = vector.broadcast %35 : vector<256x1xf32> to vector<256x256xf32>
    %37 = arith.subf %31, %36 : vector<256x256xf32>
    %c0_22 = arith.constant 0 : index
    %c0_23 = arith.constant 0 : index
    %38 = vector.load %arg9[%c0_22, %c0_23] : memref<256x256xf32, #tpu.memory_space<vmem>>, vector<256x256xf32>
    tpu.vector_store %arg9[%c0_22, %c0_23], %37 {strides = array<i32>} : memref<256x256xf32, #tpu.memory_space<vmem>>, vector<256x256xf32>,
    return
  }
  func.func @transform_0(%arg0: i32) -> (i32, i32) {
    %c0_i32 = arith.constant 0 : i32
    %c0_i32_0 = arith.constant 0 : i32
    return %arg0, %c0_i32 : i32, i32
  }
  func.func @transform_1(%arg0: i32) -> (i32, i32) {
    %c0_i32 = arith.constant 0 : i32
    %c0_i32_0 = arith.constant 0 : i32
    %c0_i32_1 = arith.constant 0 : i32
    return %c0_i32, %c0_i32_0 : i32, i32
  }
  func.func @transform_2(%arg0: i32) -> (i32, i32) {
    %c0_i32 = arith.constant 0 : i32
    %c0_i32_0 = arith.constant 0 : i32
    %c0_i32_1 = arith.constant 0 : i32
    return %c0_i32, %c0_i32_0 : i32, i32
  }
  func.func @transform_3(%arg0: i32) -> (i32, i32) {
    %c0_i32 = arith.constant 0 : i32
    %c0_i32_0 = arith.constant 0 : i32
    %c0_i32_1 = arith.constant 0 : i32
    return %c0_i32, %c0_i32_0 : i32, i32
  }
  func.func @transform_4(%arg0: i32) -> (i32, i32) {
    %c0_i32 = arith.constant 0 : i32
    %c0_i32_0 = arith.constant 0 : i32
    %c0_i32_1 = arith.constant 0 : i32
    return %c0_i32, %c0_i32_0 : i32, i32
  }
  func.func @transform_5(%arg0: i32) -> (i32, i32) {
    %c0_i32 = arith.constant 0 : i32
    %c0_i32_0 = arith.constant 0 : i32
    %c0_i32_1 = arith.constant 0 : i32
    return %c0_i32, %c0_i32_0 : i32, i32
  }
  func.func @transform_6(%arg0: i32) -> (i32, i32) {
    %c0_i32 = arith.constant 0 : i32
    %c0_i32_0 = arith.constant 0 : i32
    %c0_i32_1 = arith.constant 0 : i32
    return %c0_i32, %c0_i32_0 : i32, i32
  }
  func.func @transform_7(%arg0: i32) -> (i32, i32) {
    %c0_i32 = arith.constant 0 : i32
    %c0_i32_0 = arith.constant 0 : i32
    %c0_i32_1 = arith.constant 0 : i32
    return %c0_i32, %c0_i32_0 : i32, i32
  }
  func.func @transform_8(%arg0: i32) -> (i32, i32) {
    %c0_i32 = arith.constant 0 : i32
    %c0_i32_0 = arith.constant 0 : i32
    return %arg0, %c0_i32 : i32, i32
  }
}

</mosaic_0001>

<bundles_post_ra>
// kernel: tpu_custom_call.1
= control target key start
LH: loop header
LB: loop body
LE: loop exit
PB: predicated region body
PF: predicated region fallthrough
CT: control target
= control target key end

     0   :  { %13 = vsyncpa [#allocation3], 0  ;;  %s4331_s0 = inlined_call_operand.vmem [shape: s32[512,1], index: 0, kind: input, shape index: {}]   ;;  %s4332_s1 = inlined_call_operand.vmem [shape: bf16[256,128], index: 1, kind: input, shape index: {}]   ;;  %s4333_s2 = inlined_call_operand.vmem [shape: bf16[128,128], index: 2, kind: input, shape index: {}]   ;;  %s4334_s3 = inlined_call_operand.vmem [shape: f32[1,128], index: 3, kind: input, shape index: {}]   ;;  %s4335_s4 = inlined_call_operand.vmem [shape: bf16[128,128], index: 4, kind: input, shape index: {}]   ;;  %s4336_s5 = inlined_call_operand.vmem [shape: f32[1,128], index: 5, kind: input, shape index: {}]   ;;  %s4337_s6 = inlined_call_operand.vmem [shape: bf16[128,256], index: 6, kind: input, shape index: {}]   ;;  %s4338_s7 = inlined_call_operand.vmem [shape: f32[1,256], index: 7, kind: input, shape index: {}]   ;;  %s4339_s8 = inlined_call_operand.hbm [shape: f32[512,256], index: 8, kind: output, shape index: {}]  }
   0x1   :  { %15 = vsyncpa [#allocation3 + $0x1], 0  ;;  %s3162_s27 = smov 0   ;;  %s3164_s28 = smov 0  }
   0x2   :  { %s3166_s29 = smov 0   ;;  %s3168_s30 = smov 0  }
   0x3 LB: > { %s3183_s9 = sadd.s32 4294967295, %s3110_s30   ;;  %s2354_s10 = sadd.s32 4294967294, %s3110_s30   ;;  %s3110_s30 = sphi %s3168_s30, %s4417_s30   ;;  %s3106_s29 = sphi %s3166_s29, %s4416_s29   ;;  %s3102_s28 = sphi %s3164_s28, %s4415_s28   ;;  %s3098_s27 = sphi %s3162_s27, %s4414_s27  }
   0x4   : > { %s3187_s11 = sadd.s32 1, %s3110_s30   ;;  %s201_s12 = sadd.s32 1, %s3106_s29 }
   0x5   : > { %s198_s13 = ssub.s32 %s3110_s30, %s3187_s11  ;;  %p211_p0 = scmp.ne.s32.totalorder %s3106_s29, %s3102_s28 }
   0x6   : > { %p199_p1 = scmp.eq.s32.totalorder %s198_s13, 0  ;;  %p212_p2 = scmp.eq.s32.totalorder %s3183_s9, 1 }
   0x7   : > { %p217_p3 = scmp.ne.s32.totalorder %s3102_s28, %s3098_s27  ;;  %p218_p4 = scmp.eq.s32.totalorder %s2354_s10, 1 }
   0x8   : > { %s3198_s14 = scalar_select %p199_p1, %s3106_s29, %s201_s12  }
   0x9   : > { %p3200_p5 = por %p212_p2, %p211_p0  ;;  %p3204_p6 = por %p218_p4, %p217_p3 }
   0xa   : > { %p2357_p7 = scmp.ge.s32.totalorder %s3110_s30, 1  ;;  %p266_p8 = scmp.lt.s32.totalorder %s3110_s30, 3 }
   0xc   : > { %p267_p9 = pnand %p2357_p7, %p266_p8 }
   0xe   : > { %270 = sbr.rel (%p267_p9) target bundleno = 1502 (0x5de), region = 52 }
  0x15   : > { %s2359_s17 = sshll.u32 %s3183_s9, 5  ;;  %v3112_v0 = vmov 0   ;;  %v2800_v1 = vld [vmem:[%s4332_s1 + $0x40] sm:$0xff]   ;;  %v2802_v3 = vld [vmem:[%s4332_s1 + $0x48] sm:$0xff]   ;;  %v2804_v5 = vld [vmem:[%s4332_s1 + $0x50] sm:$0xff]   ;;  %v340_v50 = vlaneseq  ;;  %s297_s21 = sand.u32 1, %s3102_s28  }
  0x16   : > { %2799 = vset.pattern.permute.xlu1 %v3112_v0  ;;  %2798 = vset.pattern.permute.xlu0 %v3112_v0  ;;  %p301_p10 = scmp.lt.s32.totalorder %s2359_s17, 63  ;;  %v2801_v2 = vld [vmem:[%s4332_s1] sm:$0xff]   ;;  %v2803_v4 = vld [vmem:[%s4332_s1 + $0x8] sm:$0xff]   ;;  %v2805_v10 = vld [vmem:[%s4332_s1 + $0x10] sm:$0xff]   ;;  %v3113_v59 = vmov 1.0|1.0  }
  0x17   : > { %2483 = vmatprep.subr.bf16.mxu0 %v2800_v1  ;;  %2739 = vmatprep.subr.bf16.mxu1 %v2800_v1  ;;  %v2806_v15 = vld [vmem:[%s4332_s1 + $0x58] sm:$0xff]   ;;  %v2808_v18 = vld [vmem:[%s4332_s1 + $0x60] sm:$0xff]   ;;  %v2810_v21 = vld [vmem:[%s4332_s1 + $0x68] sm:$0xff]   ;;  %v3305_v51 = vand.u32 127, %v340_v50  ;;  %s2358_s22 = sshll.u32 %s297_s21, 9  ;;  %s3114_s19 = smov [#allocation2]  }
  0x18   : > { %s4419_s17 = smov (!%p301_p10, %s2359_s17), 63  ;;  %2484 = vmatpush3.bf16.msra.mxu0 %v2801_v2  ;;  %2747 = vmatpush3.bf16.msra.mxu1 %v2801_v2  ;;  %v2807_v16 = vld [vmem:[%s4332_s1 + $0x18] sm:$0xff]   ;;  %v2809_v20 = vld [vmem:[%s4332_s1 + $0x20] sm:$0xff]   ;;  %v2811_v24 = vld [vmem:[%s4332_s1 + $0x28] sm:$0xff]   ;;  %s4151_s23 = scalar_lea.vmem [#allocation2], %s2358_s22 }
  0x19   : > { %s2360_s24 = sshll.u32 %s4419_s17, 3  ;;  %2485 = vmatprep.subr.bf16.mxu0 %v2802_v3  ;;  %2740 = vmatprep.subr.bf16.mxu1 %v2802_v3  ;;  %v2812_v25 = vld [vmem:[%s4332_s1 + $0x70] sm:$0xff]   ;;  %v2814_v29 = vld [vmem:[%s4332_s1 + $0x78] sm:$0xff]   ;;  %v3301_v49 = vld [vmem:[%s4333_s2] sm:$0xff]   ;;  %v3308_v54 = vadd.s32 128, %v3305_v51  ;;  %s2292_s25 = sshll.u32 %s4151_s23, 4  ;;  %s4280_s25 = int_to_ptr.vmem [resolvable:$true] %s2292_s25 }
  0x1a   : > { %s3228_s13 = scalar_lea.vmem %s4331_s0, %s2360_s24  ;;  %v2813_v28 = vld [vmem:[%s4332_s1 + $0x30] sm:$0xff]   ;;  %v2815_v32 = vld [vmem:[%s4332_s1 + $0x38] sm:$0xff]   ;;  %s2482_s24 = sshll.u32 %s3183_s9, 13 }
  0x1b   : > { %v310_v6 = vld [vmem:[%s3228_s13 + $0x10] sm:$0xff]  ;;  %v308_v7 = vld [vmem:[%s3228_s13] sm:$0xff]  ;;  %v311_v8 = vld [vmem:[%s3228_s13 + $0x18] sm:$0xff]  ;;  %s4278_s12 = scalar_lea.hbm %s4339_s8, %s2482_s24  ;;  %s4290_s9 = scalar_lea.sflag [#allocation3], %s297_s21 }
  0x1c   : > { %350 = vperm.xlu1 %2799, %v310_v6   ;;  %344 = vperm.xlu0 %2798, %v308_v7   ;;  %v309_v9 = vld [vmem:[%s3228_s13 + $0x8] sm:$0xff]  ;;  %v312_v12 = vld [vmem:[%s3228_s13 + $0x20] sm:$0xff]  ;;  %v315_v13 = vld [vmem:[%s3228_s13 + $0x38] sm:$0xff]  ;;  %s3048_s18 = scalar_lea.vmem %s4280_s25, 8192 }
  0x1d   : > { %2486 = vmatpush3.bf16.msra.mxu0 %v2803_v4  ;;  %2748 = vmatpush3.bf16.msra.mxu1 %v2803_v4  ;;  %v313_v11 = vld [vmem:[%s3228_s13 + $0x28] sm:$0xff]  ;;  %v314_v14 = vld [vmem:[%s3228_s13 + $0x30] sm:$0xff]  ;;  %v316_v19 = vld [vmem:[%s3228_s13 + $0x40] sm:$0xff]  ;;  %p3049_p11 = scmp.ne.s32.totalorder %s4280_s25, %s3048_s18 }
  0x1e   : > { %2487 = vmatprep.subr.bf16.mxu0 %v2804_v5  ;;  %2741 = vmatprep.subr.bf16.mxu1 %v2804_v5  ;;  %v317_v17 = vld [vmem:[%s3228_s13 + $0x48] sm:$0xff]  ;;  %v319_v22 = vld [vmem:[%s3228_s13 + $0x58] sm:$0xff]  ;;  %v318_v23 = vld [vmem:[%s3228_s13 + $0x50] sm:$0xff] }
  0x1f   : > { %v321_v26 = vld [vmem:[%s3228_s13 + $0x68] sm:$0xff]  ;;  %v320_v27 = vld [vmem:[%s3228_s13 + $0x60] sm:$0xff]  ;;  %v323_v30 = vld [vmem:[%s3228_s13 + $0x78] sm:$0xff]  ;;  %p3050_p12 = pnand %p3049_p11, %p3200_p5 }
  0x20   : > { %353 = vperm.xlu1 %2799, %v311_v8   ;;  %347 = vperm.xlu0 %2798, %v309_v9   ;;  %v322_v31 = vld [vmem:[%s3228_s13 + $0x70] sm:$0xff]  ;;  %v325_v33 = vld [vmem:[%s3228_s13 + $0x88] sm:$0xff]  ;;  %v324_v34 = vld [vmem:[%s3228_s13 + $0x80] sm:$0xff] }
  0x21   : > { %2488 = vmatpush3.bf16.msra.mxu0 %v2805_v10  ;;  %2749 = vmatpush3.bf16.msra.mxu1 %v2805_v10  ;;  %v327_v35 = vld [vmem:[%s3228_s13 + $0x98] sm:$0xff]  ;;  %v326_v36 = vld [vmem:[%s3228_s13 + $0x90] sm:$0xff]  ;;  %v329_v37 = vld [vmem:[%s3228_s13 + $0xa8] sm:$0xff]  ;;  %p3051_p13 = pneg %p3050_p12 }
  0x22   : > { %2489 = vmatprep.subr.bf16.mxu0 %v2806_v15  ;;  %2742 = vmatprep.subr.bf16.mxu1 %v2806_v15  ;;  %v328_v38 = vld [vmem:[%s3228_s13 + $0xa0] sm:$0xff]  ;;  %v331_v39 = vld [vmem:[%s3228_s13 + $0xb8] sm:$0xff]  ;;  %v330_v40 = vld [vmem:[%s3228_s13 + $0xb0] sm:$0xff] }
  0x23   : > { %v333_v41 = vld [vmem:[%s3228_s13 + $0xc8] sm:$0xff]  ;;  %v332_v42 = vld [vmem:[%s3228_s13 + $0xc0] sm:$0xff]  ;;  %v335_v43 = vld [vmem:[%s3228_s13 + $0xd8] sm:$0xff] }
  0x24   : > { %359 = vperm.xlu1 %2799, %v313_v11   ;;  %356 = vperm.xlu0 %2798, %v312_v12   ;;  %v334_v44 = vld [vmem:[%s3228_s13 + $0xd0] sm:$0xff]  ;;  %v337_v45 = vld [vmem:[%s3228_s13 + $0xe8] sm:$0xff]  ;;  %v336_v46 = vld [vmem:[%s3228_s13 + $0xe0] sm:$0xff] }
  0x25   : > { %2490 = vmatpush3.bf16.msra.mxu0 %v2807_v16  ;;  %2750 = vmatpush3.bf16.msra.mxu1 %v2807_v16  ;;  %v339_v47 = vld [vmem:[%s3228_s13 + $0xf8] sm:$0xff]  ;;  %v338_v48 = vld [vmem:[%s3228_s13 + $0xf0] sm:$0xff]  ;;  %v2817_v9 = vld [vmem:[%s4333_s2 + $0x8] sm:$0xff]   ;;  %s3052_s13 = sshll.u32 %s3114_s19, 4  ;;  %s3053_s13 = int_to_ptr.vmem [resolvable:$false] %s3052_s13 }
  0x26   : > { %2491 = vmatprep.subr.bf16.mxu0 %v2808_v18  ;;  %2743 = vmatprep.subr.bf16.mxu1 %v2808_v18  ;;  %v2818_v12 = vld [vmem:[%s4333_s2 + $0x10] sm:$0xff]   ;;  %v2819_v15 = vld [vmem:[%s4333_s2 + $0x18] sm:$0xff]   ;;  %v2820_v18 = vld [vmem:[%s4333_s2 + $0x20] sm:$0xff]   ;;  %s3054_s17 = scalar_lea.vmem %s3053_s13, 16384  ;;  %p3055_p0 = scmp.lt.s32.totalorder %s4280_s25, %s3053_s13 }
  0x27   : > { %p3056_p1 = scmp.lt.s32.totalorder %s3054_s17, %s3048_s18 }
  0x28   : > { %365 = vperm.xlu1 %2799, %v315_v13   ;;  %362 = vperm.xlu0 %2798, %v314_v14  }
  0x29   : > { %2492 = vmatpush3.bf16.msra.mxu0 %v2809_v20  ;;  %2751 = vmatpush3.bf16.msra.mxu1 %v2809_v20  ;;  %p3057_p2 = por %p3056_p1, %p3055_p0 }
  0x2a   : > { %2493 = vmatprep.subr.bf16.mxu0 %v2810_v21  ;;  %2744 = vmatprep.subr.bf16.mxu1 %v2810_v21 }
  0x2b   : > { %p3058_p3 = pnand %p3057_p2, %p3051_p13 }
  0x2c   : > { %371 = vperm.xlu1 %2799, %v317_v17   ;;  %368 = vperm.xlu0 %2798, %v316_v19   ;;  %v2821_v19 = vld [vmem:[%s4333_s2 + $0x28] sm:$0xff]  }
  0x2d   : > { %2494 = vmatpush3.bf16.msra.mxu0 %v2811_v24  ;;  %2752 = vmatpush3.bf16.msra.mxu1 %v2811_v24 }
  0x2e   : > { %2495 = vmatprep.subr.bf16.mxu0 %v2812_v25  ;;  %2745 = vmatprep.subr.bf16.mxu1 %v2812_v25 }
  0x30   : > { %377 = vperm.xlu1 %2799, %v319_v22   ;;  %374 = vperm.xlu0 %2798, %v318_v23   ;;  %v2822_v22 = vld [vmem:[%s4333_s2 + $0x30] sm:$0xff]  }
  0x31   : > { %2496 = vmatpush3.bf16.msra.mxu0 %v2813_v28  ;;  %2753 = vmatpush3.bf16.msra.mxu1 %v2813_v28 }
  0x32   : > { %2497 = vmatprep.subr.bf16.mxu0 %v2814_v29  ;;  %2746 = vmatprep.subr.bf16.mxu1 %v2814_v29  ;;  %v2823_v29 = vld [vmem:[%s4333_s2 + $0x38] sm:$0xff]  }
  0x34   : > { %383 = vperm.xlu1 %2799, %v321_v26   ;;  %380 = vperm.xlu0 %2798, %v320_v27  }
  0x35   : > { %2498 = vmatpush3.bf16.msra.mxu0 %v2815_v32  ;;  %2754 = vmatpush3.bf16.msra.mxu1 %v2815_v32 }
  0x36   : > { %2643 = vmatprep.subr.bf16.mxu1 %v3301_v49 }
  0x38   : > { %389 = vperm.xlu1 %2799, %v323_v30   ;;  %386 = vperm.xlu0 %2798, %v322_v31   ;;  %v2824_v30 = vld [vmem:[%s4335_s4] sm:$0xff]  }
  0x3c   : > { %395 = vperm.xlu1 %2799, %v325_v33   ;;  %392 = vperm.xlu0 %2798, %v324_v34  }
  0x40   : > { %401 = vperm.xlu1 %2799, %v327_v35   ;;  %398 = vperm.xlu0 %2798, %v326_v36  }
  0x44   : > { %407 = vperm.xlu1 %2799, %v329_v37   ;;  %404 = vperm.xlu0 %2798, %v328_v38  }
  0x48   : > { %413 = vperm.xlu1 %2799, %v331_v39   ;;  %410 = vperm.xlu0 %2798, %v330_v40  }
  0x4c   : > { %419 = vperm.xlu1 %2799, %v333_v41   ;;  %416 = vperm.xlu0 %2798, %v332_v42  }
  0x50   : > { %425 = vperm.xlu1 %2799, %v335_v43   ;;  %422 = vperm.xlu0 %2798, %v334_v44  }
  0x54   : > { %431 = vperm.xlu1 %2799, %v337_v45   ;;  %428 = vperm.xlu0 %2798, %v336_v46   ;;  %v2825_v45 = vld [vmem:[%s4335_s4 + $0x8] sm:$0xff]  }
  0x58   : > { %437 = vperm.xlu1 %2799, %v339_v47   ;;  %434 = vperm.xlu0 %2798, %v338_v48  }
  0x9b   : > { %v351_v52 = vpop.permute.xlu1 %350  ;;  %v345_v53 = vpop.permute.xlu0 %344 }
  0x9c   : > { %vm444_vm0 = vcmp.eq.s32.totalorder %v3308_v54, %v351_v52  ;;  %vm439_vm4 = vcmp.eq.s32.totalorder %v3305_v51, %v345_v53  ;;  %vm440_vm7 = vcmp.eq.s32.totalorder %v3308_v54, %v345_v53  ;;  %vm443_vm9 = vcmp.eq.s32.totalorder %v3305_v51, %v351_v52 }
  0x9f   : > { %v354_v55 = vpop.permute.xlu1 %353  ;;  %v348_v56 = vpop.permute.xlu0 %347 }
  0xa0   : > { %vm446_vm1 = vcmp.eq.s32.totalorder %v3308_v54, %v354_v55  ;;  %vm441_vm2 = vcmp.eq.s32.totalorder %v3305_v51, %v348_v56  ;;  %vm442_vm3 = vcmp.eq.s32.totalorder %v3308_v54, %v348_v56  ;;  %vm445_vm10 = vcmp.eq.s32.totalorder %v3305_v51, %v354_v55  ;;  %v2827_v55 = vld [vmem:[%s4335_s4 + $0x18] sm:$0xff]  }
  0xa1   : > { %vm2381_vm5 = vmpackc.low %vm446_vm1, %vm444_vm0 }
  0xa2   : > { %vm2379_vm6 = vmpackc.low %vm441_vm2, %vm439_vm4 }
  0xa3   : > { %v360_v57 = vpop.permute.xlu1 %359  ;;  %v357_v58 = vpop.permute.xlu0 %356  ;;  %vm2377_vm8 = vmpackc.low %vm442_vm3, %vm440_vm7 }
  0xa4   : > { %2378 = vmatprep.mubr.msk.bf16.mxu0 %vm2377_vm8, %v3113_v59  ;;  %vm450_vm11 = vcmp.eq.s32.totalorder %v3308_v54, %v360_v57  ;;  %vm448_vm12 = vcmp.eq.s32.totalorder %v3308_v54, %v357_v58  ;;  %vm2383_vm13 = vmpackc.low %vm445_vm10, %vm443_vm9  ;;  %vm449_vm15 = vcmp.eq.s32.totalorder %v3305_v51, %v360_v57  ;;  %vm447_vm0 = vcmp.eq.s32.totalorder %v3305_v51, %v357_v58 }
  0xa5   : > { %2380 = vmatmul.mubr.msk.bf16.vlgmr.msra.gmra.mrb[0].mxu0 %vm2379_vm6, %v3113_v59  ;;  %vm2385_vm14 = vmpackc.low %vm450_vm11, %vm448_vm12 }
  0xa6   : > { %2382 = vmatprep.mubr.msk.bf16.mxu0 %vm2381_vm5, %v3113_v59  ;;  %vm2387_vm3 = vmpackc.low %vm449_vm15, %vm447_vm0 }
  0xa7   : > { %v366_v60 = vpop.permute.xlu1 %365  ;;  %v363_v61 = vpop.permute.xlu0 %362 }
  0xa8   : > { %vm454_vm1 = vcmp.eq.s32.totalorder %v3308_v54, %v366_v60  ;;  %vm452_vm2 = vcmp.eq.s32.totalorder %v3308_v54, %v363_v61  ;;  %vm453_vm5 = vcmp.eq.s32.totalorder %v3305_v51, %v366_v60  ;;  %vm451_vm6 = vcmp.eq.s32.totalorder %v3305_v51, %v363_v61  ;;  %v2828_v61 = vld [vmem:[%s4335_s4 + $0x20] sm:$0xff]  }
  0xa9   : > { %vm2389_vm4 = vmpackc.low %vm454_vm1, %vm452_vm2 }
  0xaa   : > { %vm2391_vm9 = vmpackc.low %vm453_vm5, %vm451_vm6 }
  0xab   : > { %v372_v62 = vpop.permute.xlu1 %371  ;;  %v369_v63 = vpop.permute.xlu0 %368 }
  0xac   : > { %vm458_vm7 = vcmp.eq.s32.totalorder %v3308_v54, %v372_v62  ;;  %vm456_vm8 = vcmp.eq.s32.totalorder %v3308_v54, %v369_v63  ;;  %vm455_vm5 = vcmp.eq.s32.totalorder %v3305_v51, %v369_v63 }
  0xad   : > { %2384 = vmatmul.mubr.msk.bf16.gmra.mrb[4].mxu0 %vm2383_vm13, %v3113_v59  ;;  %vm2393_vm10 = vmpackc.low %vm458_vm7, %vm456_vm8 }
  0xae   : > { %2386 = vmatprep.mubr.msk.bf16.mxu0 %vm2385_vm14, %v3113_v59 }
  0xaf   : > { %v3325_v1 = vpop.permute.xlu1 %377  ;;  %v3327_v2 = vpop.permute.xlu0 %374 }
  0xb0   : > { %vm462_vm6 = vcmp.eq.s32.totalorder %v3308_v54, %v3325_v1  ;;  %vm460_vm7 = vcmp.eq.s32.totalorder %v3308_v54, %v3327_v2 }
  0xb3   : > { %v3333_v3 = vpop.permute.xlu1 %383  ;;  %v3335_v4 = vpop.permute.xlu0 %380 }
  0xb5   : > { %2388 = vmatmul.mubr.msk.bf16.gmra.mrb[8].mxu0 %vm2387_vm3, %v3113_v59 }
  0xb6   : > { %2390 = vmatprep.mubr.msk.bf16.mxu0 %vm2389_vm4, %v3113_v59  ;;  %vm457_vm4 = vcmp.eq.s32.totalorder %v3305_v51, %v372_v62 }
  0xb7   : > { %v3339_v5 = vpop.permute.xlu1 %389  ;;  %v3341_v6 = vpop.permute.xlu0 %386 }
  0xbb   : > { %v396_v7 = vpop.permute.xlu1 %395  ;;  %v393_v8 = vpop.permute.xlu0 %392 }
  0xbc   : > { %vm473_vm11 = vcmp.eq.s32.totalorder %v3305_v51, %v396_v7  ;;  %vm471_vm12 = vcmp.eq.s32.totalorder %v3305_v51, %v393_v8  ;;  %vm472_vm13 = vcmp.eq.s32.totalorder %v3308_v54, %v393_v8  ;;  %vm474_vm14 = vcmp.eq.s32.totalorder %v3308_v54, %v396_v7  ;;  %v2829_v7 = vld [vmem:[%s4335_s4 + $0x28] sm:$0xff]  }
  0xbd   : > { %vm2411_vm15 = vmpackc.low %vm473_vm11, %vm471_vm12  ;;  %2392 = vmatmul.mubr.msk.bf16.gmra.mrb[12].mxu0 %vm2391_vm9, %v3113_v59 }
  0xbe   : > { %vm2409_vm0 = vmpackc.low %vm474_vm14, %vm472_vm13  ;;  %2394 = vmatprep.mubr.msk.bf16.mxu0 %vm2393_vm10, %v3113_v59 }
  0xbf   : > { %2410 = vmatprep.mubr.msk.bf16.mxu1 %vm2409_vm0, %v3113_v59  ;;  %v402_v10 = vpop.permute.xlu1 %401  ;;  %v399_v11 = vpop.permute.xlu0 %398  ;;  %vm2395_vm10 = vmpackc.low %vm457_vm4, %vm455_vm5  ;;  %vm461_vm0 = vcmp.eq.s32.totalorder %v3305_v51, %v3325_v1 }
  0xc0   : > { %vm478_vm1 = vcmp.eq.s32.totalorder %v3308_v54, %v402_v10  ;;  %2412 = vmatmul.mubr.msk.bf16.vlgmr.msra.gmra.mrb[0].mxu1 %vm2411_vm15, %v3113_v59  ;;  %vm476_vm2 = vcmp.eq.s32.totalorder %v3308_v54, %v399_v11  ;;  %vm477_vm8 = vcmp.eq.s32.totalorder %v3305_v51, %v402_v10  ;;  %vm475_vm9 = vcmp.eq.s32.totalorder %v3305_v51, %v399_v11  ;;  %vm2397_vm13 = vmpackc.low %vm462_vm6, %vm460_vm7 }
  0xc1   : > { %vm2413_vm3 = vmpackc.low %vm478_vm1, %vm476_vm2  ;;  %2644 = vmatpush3.bf16.msra.mxu1 %v3301_v49  ;;  %vm459_vm1 = vcmp.eq.s32.totalorder %v3305_v51, %v3327_v2  ;;  %vm466_vm2 = vcmp.eq.s32.totalorder %v3308_v54, %v3333_v3 }
  0xc2   : > { %2414 = vmatprep.mubr.msk.bf16.mxu1 %vm2413_vm3, %v3113_v59  ;;  %2645 = vmatprep.subr.bf16.mxu1 %v2817_v9  ;;  %vm2415_vm14 = vmpackc.low %vm477_vm8, %vm475_vm9  ;;  %vm464_vm3 = vcmp.eq.s32.totalorder %v3308_v54, %v3335_v4 }
  0xc3   : > { %v408_v13 = vpop.permute.xlu1 %407  ;;  %v405_v14 = vpop.permute.xlu0 %404  ;;  %vm2399_vm6 = vmpackc.low %vm461_vm0, %vm459_vm1 }
  0xc4   : > { %vm482_vm11 = vcmp.eq.s32.totalorder %v3308_v54, %v408_v13  ;;  %vm480_vm12 = vcmp.eq.s32.totalorder %v3308_v54, %v405_v14  ;;  %vm481_vm4 = vcmp.eq.s32.totalorder %v3305_v51, %v408_v13  ;;  %vm479_vm5 = vcmp.eq.s32.totalorder %v3305_v51, %v405_v14  ;;  %vm2401_vm9 = vmpackc.low %vm466_vm2, %vm464_vm3  ;;  %v2830_v14 = vld [vmem:[%s4335_s4 + $0x30] sm:$0xff]  }
  0xc5   : > { %2646 = vmatpush3.bf16.msra.mxu1 %v2817_v9  ;;  %2396 = vmatmul.mubr.msk.bf16.gmra.mrb[16].mxu0 %vm2395_vm10, %v3113_v59  ;;  %vm2417_vm15 = vmpackc.low %vm482_vm11, %vm480_vm12  ;;  %vm465_vm12 = vcmp.eq.s32.totalorder %v3305_v51, %v3333_v3 }
  0xc6   : > { %2647 = vmatprep.subr.bf16.mxu1 %v2818_v12  ;;  %2398 = vmatprep.mubr.msk.bf16.mxu0 %vm2397_vm13, %v3113_v59  ;;  %vm2419_vm10 = vmpackc.low %vm481_vm4, %vm479_vm5  ;;  %vm463_vm13 = vcmp.eq.s32.totalorder %v3305_v51, %v3335_v4 }
  0xc7   : > { %v414_v16 = vpop.permute.xlu1 %413  ;;  %v411_v17 = vpop.permute.xlu0 %410  ;;  %vm2403_vm2 = vmpackc.low %vm465_vm12, %vm463_vm13 }
  0xc8   : > { %2416 = vmatmul.mubr.msk.bf16.gmra.mrb[4].mxu1 %vm2415_vm14, %v3113_v59  ;;  %vm486_vm7 = vcmp.eq.s32.totalorder %v3308_v54, %v414_v16  ;;  %vm484_vm8 = vcmp.eq.s32.totalorder %v3308_v54, %v411_v17  ;;  %vm470_vm14 = vcmp.eq.s32.totalorder %v3308_v54, %v3339_v5  ;;  %vm485_vm0 = vcmp.eq.s32.totalorder %v3305_v51, %v414_v16 }
  0xc9   : > { %2418 = vmatprep.mubr.msk.bf16.mxu1 %vm2417_vm15, %v3113_v59  ;;  %2648 = vmatpush3.bf16.msra.mxu1 %v2818_v12  ;;  %vm2421_vm11 = vmpackc.low %vm486_vm7, %vm484_vm8  ;;  %vm468_vm15 = vcmp.eq.s32.totalorder %v3308_v54, %v3341_v6  ;;  %vm483_vm1 = vcmp.eq.s32.totalorder %v3305_v51, %v411_v17  ;;  %vm469_vm8 = vcmp.eq.s32.totalorder %v3305_v51, %v3339_v5 }
  0xca   : > { %2649 = vmatprep.subr.bf16.mxu1 %v2819_v15  ;;  %vm2405_vm5 = vmpackc.low %vm470_vm14, %vm468_vm15 }
  0xcb   : > { %v420_v20 = vpop.permute.xlu1 %419  ;;  %v417_v21 = vpop.permute.xlu0 %416 }
  0xcc   : > { %vm490_vm3 = vcmp.eq.s32.totalorder %v3308_v54, %v420_v20  ;;  %vm488_vm4 = vcmp.eq.s32.totalorder %v3308_v54, %v417_v21 }
  0xcd   : > { %2650 = vmatpush3.bf16.msra.mxu1 %v2819_v15  ;;  %2400 = vmatmul.mubr.msk.bf16.gmra.mrb[20].mxu0 %vm2399_vm6, %v3113_v59  ;;  %vm2423_vm6 = vmpackc.low %vm485_vm0, %vm483_vm1 }
  0xce   : > { %2651 = vmatprep.subr.bf16.mxu1 %v2820_v18  ;;  %2402 = vmatprep.mubr.msk.bf16.mxu0 %vm2401_vm9, %v3113_v59  ;;  %vm2425_vm7 = vmpackc.low %vm490_vm3, %vm488_vm4  ;;  %vm467_vm9 = vcmp.eq.s32.totalorder %v3305_v51, %v3341_v6 }
  0xcf   : > { %v426_v23 = vpop.permute.xlu1 %425  ;;  %v423_v24 = vpop.permute.xlu0 %422  ;;  %vm2407_vm12 = vmpackc.low %vm469_vm8, %vm467_vm9 }
  0xd0   : > { %2420 = vmatmul.mubr.msk.bf16.gmra.mrb[8].mxu1 %vm2419_vm10, %v3113_v59  ;;  %vm489_vm10 = vcmp.eq.s32.totalorder %v3305_v51, %v420_v20  ;;  %vm494_vm13 = vcmp.eq.s32.totalorder %v3308_v54, %v426_v23  ;;  %vm492_vm14 = vcmp.eq.s32.totalorder %v3308_v54, %v423_v24  ;;  %vm493_vm1 = vcmp.eq.s32.totalorder %v3305_v51, %v426_v23 }
  0xd1   : > { %2422 = vmatprep.mubr.msk.bf16.mxu1 %vm2421_vm11, %v3113_v59  ;;  %2652 = vmatpush3.bf16.msra.mxu1 %v2820_v18  ;;  %vm487_vm11 = vcmp.eq.s32.totalorder %v3305_v51, %v417_v21  ;;  %vm2429_vm0 = vmpackc.low %vm494_vm13, %vm492_vm14 }
  0xd2   : > { %2653 = vmatprep.subr.bf16.mxu1 %v2821_v19  ;;  %vm2427_vm15 = vmpackc.low %vm489_vm10, %vm487_vm11 }
  0xd3   : > { %v432_v25 = vpop.permute.xlu1 %431  ;;  %v429_v26 = vpop.permute.xlu0 %428 }
  0xd4   : > { %vm498_vm3 = vcmp.eq.s32.totalorder %v3308_v54, %v432_v25  ;;  %vm496_vm4 = vcmp.eq.s32.totalorder %v3308_v54, %v429_v26  ;;  %vm495_vm8 = vcmp.eq.s32.totalorder %v3305_v51, %v429_v26 }
  0xd5   : > { %2654 = vmatpush3.bf16.msra.mxu1 %v2821_v19  ;;  %2404 = vmatmul.mubr.msk.bf16.gmra.mrb[24].mxu0 %vm2403_vm2, %v3113_v59  ;;  %vm491_vm2 = vcmp.eq.s32.totalorder %v3305_v51, %v423_v24 }
  0xd6   : > { %2655 = vmatprep.subr.bf16.mxu1 %v2822_v22  ;;  %2406 = vmatprep.mubr.msk.bf16.mxu0 %vm2405_vm5, %v3113_v59  ;;  %vm2431_vm5 = vmpackc.low %vm493_vm1, %vm491_vm2 }
  0xd7   : > { %v438_v27 = vpop.permute.xlu1 %437  ;;  %v435_v28 = vpop.permute.xlu0 %434 }
  0xd8   : > { %2424 = vmatmul.mubr.msk.bf16.gmra.mrb[12].mxu1 %vm2423_vm6, %v3113_v59  ;;  %vm2433_vm6 = vmpackc.low %vm498_vm3, %vm496_vm4  ;;  %vm502_vm9 = vcmp.eq.s32.totalorder %v3308_v54, %v438_v27  ;;  %vm500_vm10 = vcmp.eq.s32.totalorder %v3308_v54, %v435_v28  ;;  %vm501_vm13 = vcmp.eq.s32.totalorder %v3305_v51, %v438_v27  ;;  %vm499_vm14 = vcmp.eq.s32.totalorder %v3305_v51, %v435_v28 }
  0xd9   : > { %2426 = vmatprep.mubr.msk.bf16.mxu1 %vm2425_vm7, %v3113_v59  ;;  %2656 = vmatpush3.bf16.msra.mxu1 %v2822_v22  ;;  %vm497_vm7 = vcmp.eq.s32.totalorder %v3305_v51, %v432_v25  ;;  %v2826_v51 = vld [vmem:[%s4335_s4 + $0x10] sm:$0xff]  }
  0xda   : > { %vm2435_vm11 = vmpackc.low %vm497_vm7, %vm495_vm8  ;;  %2657 = vmatprep.subr.bf16.mxu1 %v2823_v29 }
  0xdd   : > { %2408 = vmatmul.mubr.msk.bf16.gmra.mrb[28].mxu0 %vm2407_vm12, %v3113_v59  ;;  %vm2437_vm12 = vmpackc.low %vm502_vm9, %vm500_vm10  ;;  %2658 = vmatpush3.bf16.msra.mxu1 %v2823_v29 }
  0xde   : > { %1540 = vmatprep.mubr.bf16.mxu0 %v3112_v0  ;;  %2691 = vmatprep.subr.bf16.mxu1 %v2824_v30 }
  0xe0   : > { %2428 = vmatmul.mubr.msk.bf16.gmra.mrb[16].mxu1 %vm2427_vm15, %v3113_v59  ;;  %vm2439_vm15 = vmpackc.low %vm501_vm13, %vm499_vm14 }
  0xe1   : > { %2430 = vmatprep.mubr.msk.bf16.mxu1 %vm2429_vm0, %v3113_v59 }
  0xe8   : > { %2432 = vmatmul.mubr.msk.bf16.gmra.mrb[20].mxu1 %vm2431_vm5, %v3113_v59 }
  0xe9   : > { %2434 = vmatprep.mubr.msk.bf16.mxu1 %vm2433_vm6, %v3113_v59 }
  0xf0   : > { %2436 = vmatmul.mubr.msk.bf16.gmra.mrb[24].mxu1 %vm2435_vm11, %v3113_v59 }
  0xf1   : > { %2438 = vmatprep.mubr.msk.bf16.mxu1 %vm2437_vm12, %v3113_v59 }
  0xf8   : > { %2440 = vmatmul.mubr.msk.bf16.gmra.mrb[28].mxu1 %vm2439_vm15, %v3113_v59 }
 0x178   : > { %v2499_v31 = vpop.f32.mrb[0].mxu0 }
 0x179   : > { %v2500_v32 = vpop.f32.mrb[1].mxu0 }
 0x17a   : > { %v2501_v33 = vadd.f32 %v2500_v32, %v2499_v31  ;;  %v2502_v34 = vpop.f32.mrb[2].mxu0 }
 0x17b   : > { %v2503_v35 = vpop.f32.mrb[3].mxu0 }
 0x17c   : > { %v2504_v36 = vadd.f32 %v2503_v35, %v2502_v34 }
 0x17e   : > { %v905_v37 = vpack.c.bf16 %v2504_v36, %v2501_v33 }
 0x180   : > { %v2505_v38 = vpop.f32.mrb[4].mxu0  ;;  %2659 = vmatprep.mubr.bf16.mxu1 %v905_v37 }
 0x181   : > { %v2506_v39 = vpop.f32.mrb[5].mxu0 }
 0x182   : > { %v2507_v40 = vadd.f32 %v2506_v39, %v2505_v38  ;;  %v2508_v41 = vpop.f32.mrb[6].mxu0 }
 0x183   : > { %v2509_v42 = vpop.f32.mrb[7].mxu0 }
 0x184   : > { %v2510_v43 = vadd.f32 %v2509_v42, %v2508_v41 }
 0x186   : > { %v906_v44 = vpack.c.bf16 %v2510_v43, %v2507_v40 }
 0x188   : > { %v2511_v46 = vpop.f32.mrb[8].mxu0  ;;  %2660 = vmatmul.mubr.bf16.vlgmr.msra.gmra.mrb[32].mxu1 %v906_v44 }
 0x189   : > { %v2512_v47 = vpop.f32.mrb[9].mxu0  ;;  %2692 = vmatpush3.bf16.msra.mxu1 %v2824_v30 }
 0x18a   : > { %v2513_v48 = vadd.f32 %v2512_v47, %v2511_v46  ;;  %v2514_v49 = vpop.f32.mrb[10].mxu0  ;;  %2693 = vmatprep.subr.bf16.mxu1 %v2825_v45 }
 0x18b   : > { %v2515_v52 = vpop.f32.mrb[11].mxu0 }
 0x18c   : > { %v2516_v53 = vadd.f32 %v2515_v52, %v2514_v49 }
 0x18d   : > { %2694 = vmatpush3.bf16.msra.mxu1 %v2825_v45 }
 0x18e   : > { %v907_v54 = vpack.c.bf16 %v2516_v53, %v2513_v48  ;;  %2695 = vmatprep.subr.bf16.mxu1 %v2826_v51 }
 0x190   : > { %v2517_v56 = vpop.f32.mrb[12].mxu0  ;;  %2663 = vmatprep.mubr.bf16.mxu1 %v907_v54 }
 0x191   : > { %v2518_v57 = vpop.f32.mrb[13].mxu0  ;;  %2696 = vmatpush3.bf16.msra.mxu1 %v2826_v51 }
 0x192   : > { %v2519_v58 = vadd.f32 %v2518_v57, %v2517_v56  ;;  %v2520_v59 = vpop.f32.mrb[14].mxu0  ;;  %2697 = vmatprep.subr.bf16.mxu1 %v2827_v55 }
 0x193   : > { %v2547_v60 = vpop.f32.mrb[0].mxu1  ;;  %v2521_v62 = vpop.f32.mrb[15].mxu0 }
 0x194   : > { %v2548_v63 = vpop.f32.mrb[1].mxu1  ;;  %v2522_v1 = vadd.f32 %v2521_v62, %v2520_v59 }
 0x195   : > { %v3468_v2 = vadd.f32 %v2548_v63, %v2547_v60  ;;  %v2550_v3 = vpop.f32.mrb[2].mxu1  ;;  %2698 = vmatpush3.bf16.msra.mxu1 %v2827_v55 }
 0x196   : > { %v2551_v4 = vpop.f32.mrb[3].mxu1  ;;  %v908_v5 = vpack.c.bf16 %v2522_v1, %v2519_v58  ;;  %2699 = vmatprep.subr.bf16.mxu1 %v2828_v61 }
 0x197   : > { %v3470_v6 = vadd.f32 %v2551_v4, %v2550_v3 }
 0x198   : > { %v2523_v9 = vpop.f32.mrb[16].mxu0  ;;  %2664 = vmatmul.mubr.bf16.gmra.mrb[36].mxu1 %v908_v5 }
 0x199   : > { %v913_v8 = vpack.c.bf16 %v3470_v6, %v3468_v2  ;;  %v2524_v10 = vpop.f32.mrb[17].mxu0  ;;  %2700 = vmatpush3.bf16.msra.mxu1 %v2828_v61 }
 0x19a   : > { %v2525_v11 = vadd.f32 %v2524_v10, %v2523_v9  ;;  %v2526_v12 = vpop.f32.mrb[18].mxu0  ;;  %2701 = vmatprep.subr.bf16.mxu1 %v2829_v7 }
 0x19b   : > { %v2553_v13 = vpop.f32.mrb[4].mxu1  ;;  %v2527_v15 = vpop.f32.mrb[19].mxu0 }
 0x19c   : > { %v2554_v16 = vpop.f32.mrb[5].mxu1  ;;  %v2528_v17 = vadd.f32 %v2527_v15, %v2526_v12 }
 0x19d   : > { %v3480_v18 = vadd.f32 %v2554_v16, %v2553_v13  ;;  %v2556_v19 = vpop.f32.mrb[6].mxu1  ;;  %2702 = vmatpush3.bf16.msra.mxu1 %v2829_v7 }
 0x19e   : > { %v2557_v20 = vpop.f32.mrb[7].mxu1  ;;  %v909_v21 = vpack.c.bf16 %v2528_v17, %v2525_v11  ;;  %2703 = vmatprep.subr.bf16.mxu1 %v2830_v14 }
 0x19f   : > { %v2558_v22 = vadd.f32 %v2557_v20, %v2556_v19 }
 0x1a0   : > { %v2529_v24 = vpop.f32.mrb[20].mxu0  ;;  %2667 = vmatprep.mubr.bf16.mxu1 %v909_v21 }
 0x1a1   : > { %v914_v23 = vpack.c.bf16 %v2558_v22, %v3480_v18  ;;  %v2530_v25 = vpop.f32.mrb[21].mxu0  ;;  %2704 = vmatpush3.bf16.msra.mxu1 %v2830_v14 }
 0x1a2   : > { %v2531_v26 = vadd.f32 %v2530_v25, %v2529_v24  ;;  %v2532_v27 = vpop.f32.mrb[22].mxu0 }
 0x1a3   : > { %v2559_v28 = vpop.f32.mrb[8].mxu1  ;;  %v2533_v29 = vpop.f32.mrb[23].mxu0 }
 0x1a4   : > { %v2560_v30 = vpop.f32.mrb[9].mxu1  ;;  %v2534_v31 = vadd.f32 %v2533_v29, %v2532_v27  ;;  %v2834_v27 = vld [vmem:[%s4337_s6 + $0x4] ss:$8 sps:$4 sm:$0xff]   ;;  %v2835_v29 = vld [vmem:[%s4337_s6 + $0x10] ss:$8 sps:$4 sm:$0xff]  }
 0x1a5   : > { %v2561_v32 = vadd.f32 %v2560_v30, %v2559_v28  ;;  %v2562_v33 = vpop.f32.mrb[10].mxu1  ;;  %v2837_v28 = vld [vmem:[%s4337_s6 + $0x14] ss:$8 sps:$4 sm:$0xff]   ;;  %1508 = vmatprep.subr.bf16.mxu0 %v2834_v27  ;;  %v2840_v30 = vld [vmem:[%s4337_s6 + $0x24] ss:$8 sps:$4 sm:$0xff]  }
 0x1a6   : > { %v2563_v34 = vpop.f32.mrb[11].mxu1  ;;  %v910_v35 = vpack.c.bf16 %v2534_v31, %v2531_v26  ;;  %v2832_v26 = vld [vmem:[%s4337_s6] ss:$8 sps:$4 sm:$0xff]  }
 0x1a7   : > { %v2564_v36 = vadd.f32 %v2563_v34, %v2562_v33  ;;  %1509 = vmatpush1.bf16.msra.mxu0 %v2832_v26  ;;  %v2838_v31 = vld [vmem:[%s4337_s6 + $0x20] ss:$8 sps:$4 sm:$0xff]   ;;  %v2841_v33 = vld [vmem:[%s4337_s6 + $0x30] ss:$8 sps:$4 sm:$0xff]   ;;  %v2846_v34 = vld [vmem:[%s4337_s6 + $0x44] ss:$8 sps:$4 sm:$0xff]  }
 0x1a8   : > { %v2535_v38 = vpop.f32.mrb[24].mxu0  ;;  %2668 = vmatmul.mubr.bf16.gmra.mrb[40].mxu1 %v910_v35  ;;  %1510 = vmatprep.subr.bf16.mxu0 %v2837_v28  ;;  %v2844_v35 = vld [vmem:[%s4337_s6 + $0x40] ss:$8 sps:$4 sm:$0xff]  }
 0x1a9   : > { %v915_v37 = vpack.c.bf16 %v2564_v36, %v2561_v32  ;;  %v2536_v39 = vpop.f32.mrb[25].mxu0  ;;  %v2843_v32 = vld [vmem:[%s4337_s6 + $0x34] ss:$8 sps:$4 sm:$0xff]  }
 0x1aa   : > { %v2537_v40 = vadd.f32 %v2536_v39, %v2535_v38  ;;  %v2538_v41 = vpop.f32.mrb[26].mxu0  ;;  %v2849_v36 = vld [vmem:[%s4337_s6 + $0x54] ss:$8 sps:$4 sm:$0xff]   ;;  %v2852_v38 = vld [vmem:[%s4337_s6 + $0x64] ss:$8 sps:$4 sm:$0xff]  }
 0x1ab   : > { %v2565_v42 = vpop.f32.mrb[12].mxu1  ;;  %v2539_v43 = vpop.f32.mrb[27].mxu0  ;;  %1511 = vmatpush1.bf16.msra.mxu0 %v2835_v29  ;;  %v2850_v39 = vld [vmem:[%s4337_s6 + $0x60] ss:$8 sps:$4 sm:$0xff]  }
 0x1ac   : > { %v2566_v44 = vpop.f32.mrb[13].mxu1  ;;  %v2540_v45 = vadd.f32 %v2539_v43, %v2538_v41  ;;  %1512 = vmatprep.subr.bf16.mxu0 %v2840_v30  ;;  %v2853_v41 = vld [vmem:[%s4337_s6 + $0x70] ss:$8 sps:$4 sm:$0xff]   ;;  %v3540_v43 = vld [vmem:[%s4334_s3] ss:$0 sm:$0xff] }
 0x1ad   : > { %v2567_v46 = vadd.f32 %v2566_v44, %v2565_v42  ;;  %v2568_v47 = vpop.f32.mrb[14].mxu1 }
 0x1ae   : > { %v2569_v48 = vpop.f32.mrb[15].mxu1  ;;  %v911_v49 = vpack.c.bf16 %v2540_v45, %v2537_v40  ;;  %v2855_v40 = vld [vmem:[%s4337_s6 + $0x74] ss:$8 sps:$4 sm:$0xff]  }
 0x1af   : > { %v2570_v51 = vadd.f32 %v2569_v48, %v2568_v47  ;;  %1513 = vmatpush1.bf16.msra.mxu0 %v2838_v31 }
 0x1b0   : > { %v2541_v53 = vpop.f32.mrb[28].mxu0  ;;  %2671 = vmatprep.mubr.bf16.mxu1 %v911_v49  ;;  %1514 = vmatprep.subr.bf16.mxu0 %v2843_v32 }
 0x1b1   : > { %v916_v52 = vpack.c.bf16 %v2570_v51, %v2567_v46  ;;  %v2542_v54 = vpop.f32.mrb[29].mxu0 }
 0x1b2   : > { %v2543_v55 = vadd.f32 %v2542_v54, %v2541_v53  ;;  %v2544_v56 = vpop.f32.mrb[30].mxu0 }
 0x1b3   : > { %v2571_v57 = vpop.f32.mrb[16].mxu1  ;;  %v2545_v58 = vpop.f32.mrb[31].mxu0  ;;  %1515 = vmatpush1.bf16.msra.mxu0 %v2841_v33 }
 0x1b4   : > { %v2572_v59 = vpop.f32.mrb[17].mxu1  ;;  %v2546_v60 = vadd.f32 %v2545_v58, %v2544_v56  ;;  %1516 = vmatprep.subr.bf16.mxu0 %v2846_v34 }
 0x1b5   : > { %v2573_v61 = vadd.f32 %v2572_v59, %v2571_v57  ;;  %v2574_v62 = vpop.f32.mrb[18].mxu1 }
 0x1b6   : > { %v2575_v63 = vpop.f32.mrb[19].mxu1  ;;  %v912_v1 = vpack.c.bf16 %v2546_v60, %v2543_v55 }
 0x1b7   : > { %v2576_v3 = vadd.f32 %v2575_v63, %v2574_v62  ;;  %1517 = vmatpush1.bf16.msra.mxu0 %v2844_v35 }
 0x1b8   : > { %2672 = vmatmul.mubr.bf16.gmra.mrb[44].mxu1 %v912_v1  ;;  %1518 = vmatprep.subr.bf16.mxu0 %v2849_v36 }
 0x1b9   : > { %v917_v4 = vpack.c.bf16 %v2576_v3, %v2573_v61  ;;  %2675 = vmatprep.mubr.bf16.mxu1 %v913_v8 }
 0x1bb   : > { %v2577_v5 = vpop.f32.mrb[20].mxu1 }
 0x1bc   : > { %v2578_v7 = vpop.f32.mrb[21].mxu1 }
 0x1bd   : > { %v2579_v9 = vadd.f32 %v2578_v7, %v2577_v5  ;;  %v2580_v10 = vpop.f32.mrb[22].mxu1 }
 0x1be   : > { %v2581_v11 = vpop.f32.mrb[23].mxu1 }
 0x1bf   : > { %v2582_v12 = vadd.f32 %v2581_v11, %v2580_v10 }
 0x1c0   : > { %2676 = vmatmul.mubr.bf16.gmra.mrb[48].mxu1 %v914_v23  ;;  %v2831_v23 = vld [vmem:[%s4335_s4 + $0x38] sm:$0xff]  }
 0x1c1   : > { %v918_v13 = vpack.c.bf16 %v2582_v12, %v2579_v9  ;;  %2679 = vmatprep.mubr.bf16.mxu1 %v915_v37  ;;  %2705 = vmatprep.subr.bf16.mxu1 %v2831_v23  ;;  %v2847_v37 = vld [vmem:[%s4337_s6 + $0x50] ss:$8 sps:$4 sm:$0xff]  }
 0x1c2   : > { %2706 = vmatpush3.bf16.msra.mxu1 %v2831_v23  ;;  %1519 = vmatpush1.bf16.msra.mxu0 %v2847_v37 }
 0x1c3   : > { %v2583_v14 = vpop.f32.mrb[24].mxu1  ;;  %1520 = vmatprep.subr.bf16.mxu0 %v2852_v38 }
 0x1c4   : > { %v2584_v15 = vpop.f32.mrb[25].mxu1 }
 0x1c5   : > { %v2585_v16 = vadd.f32 %v2584_v15, %v2583_v14  ;;  %v2586_v17 = vpop.f32.mrb[26].mxu1 }
 0x1c6   : > { %v2587_v18 = vpop.f32.mrb[27].mxu1  ;;  %1521 = vmatpush1.bf16.msra.mxu0 %v2850_v39 }
 0x1c7   : > { %v2588_v19 = vadd.f32 %v2587_v18, %v2586_v17  ;;  %1522 = vmatprep.subr.bf16.mxu0 %v2855_v40 }
 0x1c8   : > { %2680 = vmatmul.mubr.bf16.gmra.mrb[52].mxu1 %v916_v52 }
 0x1c9   : > { %v919_v20 = vpack.c.bf16 %v2588_v19, %v2585_v16  ;;  %2683 = vmatprep.mubr.bf16.mxu1 %v917_v4 }
 0x1ca   : > { %1523 = vmatpush1.bf16.msra.mxu0 %v2853_v41 }
 0x1cb   : > { %v2589_v2 = vpop.f32.mrb[28].mxu1 }
 0x1cc   : > { %v2590_v6 = vpop.f32.mrb[29].mxu1 }
 0x1cd   : > { %v2591_v8 = vadd.f32 %v2590_v6, %v2589_v2  ;;  %v2592_v21 = vpop.f32.mrb[30].mxu1 }
 0x1ce   : > { %v2593_v22 = vpop.f32.mrb[31].mxu1 }
 0x1cf   : > { %v2594_v24 = vadd.f32 %v2593_v22, %v2592_v21 }
 0x1d0   : > { %2684 = vmatmul.mubr.bf16.gmra.mrb[56].mxu1 %v918_v13 }
 0x1d1   : > { %v920_v25 = vpack.c.bf16 %v2594_v24, %v2591_v8  ;;  %2687 = vmatprep.mubr.bf16.mxu1 %v919_v20 }
 0x1d8   : > { %2688 = vmatmul.mubr.bf16.gmra.mrb[60].mxu1 %v920_v25 }
 0x25b   : > { %v2661_v42 = vpop.f32.mrb[32].mxu1 }
 0x25c   : > { %v1009_v44 = vpop.f32.mrb[33].mxu1  ;;  %v1018_v46 = vadd.f32 %v2661_v42, %v3540_v43 }
 0x25d   : > { %v2662_v45 = vpop.f32.mrb[34].mxu1  ;;  %v1010_v49 = vadd.f32 %v3540_v43, %v1009_v44 }
 0x25e   : > { %v1021_v47 = vadd.f32 %v2662_v45, %v3540_v43  ;;  %v1012_v48 = vpop.f32.mrb[35].mxu1 }
 0x25f   : > { %v1013_v51 = vadd.f32 %v3540_v43, %v1012_v48 }
 0x260   : > { %v1154_v52 = vpack.c.bf16 %v1021_v47, %v1018_v46 }
 0x261   : > { %v1153_v53 = vpack.c.bf16 %v1013_v51, %v1010_v49 }
 0x263   : > { %2707 = vmatprep.mubr.bf16.mxu1 %v1153_v53 }
 0x264   : > { %2708 = vmatmul.mubr.bf16.vlgmr.msra.gmra.mrb[64].mxu1 %v1154_v52 }
 0x26b   : > { %v2665_v54 = vpop.f32.mrb[36].mxu1 }
 0x26c   : > { %v1025_v55 = vpop.f32.mrb[37].mxu1  ;;  %v1034_v57 = vadd.f32 %v2665_v54, %v3540_v43 }
 0x26d   : > { %v2666_v56 = vpop.f32.mrb[38].mxu1  ;;  %v1026_v60 = vadd.f32 %v3540_v43, %v1025_v55 }
 0x26e   : > { %v1037_v58 = vadd.f32 %v2666_v56, %v3540_v43  ;;  %v1028_v59 = vpop.f32.mrb[39].mxu1 }
 0x26f   : > { %v1029_v61 = vadd.f32 %v3540_v43, %v1028_v59 }
 0x270   : > { %v1156_v62 = vpack.c.bf16 %v1037_v58, %v1034_v57 }
 0x271   : > { %v1155_v63 = vpack.c.bf16 %v1029_v61, %v1026_v60 }
 0x273   : > { %2711 = vmatprep.mubr.bf16.mxu1 %v1155_v63 }
 0x274   : > { %2712 = vmatmul.mubr.bf16.gmra.mrb[68].mxu1 %v1156_v62 }
 0x27b   : > { %v2669_v1 = vpop.f32.mrb[40].mxu1 }
 0x27c   : > { %v1041_v3 = vpop.f32.mrb[41].mxu1  ;;  %v1050_v5 = vadd.f32 %v2669_v1, %v3540_v43  ;;  %v3577_v1 = vld [vmem:[%s4336_s5] ss:$0 sm:$0xff] }
 0x27d   : > { %v2670_v4 = vpop.f32.mrb[42].mxu1  ;;  %v1042_v10 = vadd.f32 %v3540_v43, %v1041_v3 }
 0x27e   : > { %v1053_v7 = vadd.f32 %v2670_v4, %v3540_v43  ;;  %v1044_v9 = vpop.f32.mrb[43].mxu1 }
 0x27f   : > { %v1045_v11 = vadd.f32 %v3540_v43, %v1044_v9 }
 0x280   : > { %v1158_v12 = vpack.c.bf16 %v1053_v7, %v1050_v5 }
 0x281   : > { %v1157_v13 = vpack.c.bf16 %v1045_v11, %v1042_v10 }
 0x283   : > { %2715 = vmatprep.mubr.bf16.mxu1 %v1157_v13 }
 0x284   : > { %2716 = vmatmul.mubr.bf16.gmra.mrb[72].mxu1 %v1158_v12 }
 0x28b   : > { %v2673_v14 = vpop.f32.mrb[44].mxu1 }
 0x28c   : > { %v1057_v15 = vpop.f32.mrb[45].mxu1  ;;  %v1066_v17 = vadd.f32 %v2673_v14, %v3540_v43 }
 0x28d   : > { %v2674_v16 = vpop.f32.mrb[46].mxu1  ;;  %v1058_v20 = vadd.f32 %v3540_v43, %v1057_v15 }
 0x28e   : > { %v1069_v18 = vadd.f32 %v2674_v16, %v3540_v43  ;;  %v1060_v19 = vpop.f32.mrb[47].mxu1 }
 0x28f   : > { %v1061_v2 = vadd.f32 %v3540_v43, %v1060_v19 }
 0x290   : > { %v1160_v6 = vpack.c.bf16 %v1069_v18, %v1066_v17 }
 0x291   : > { %v1159_v8 = vpack.c.bf16 %v1061_v2, %v1058_v20 }
 0x293   : > { %v2677_v21 = vpop.f32.mrb[48].mxu1  ;;  %2719 = vmatprep.mubr.bf16.mxu1 %v1159_v8 }
 0x294   : > { %v1073_v22 = vpop.f32.mrb[49].mxu1  ;;  %2720 = vmatmul.mubr.bf16.gmra.mrb[76].mxu1 %v1160_v6  ;;  %v1082_v25 = vadd.f32 %v2677_v21, %v3540_v43 }
 0x295   : > { %v2678_v24 = vpop.f32.mrb[50].mxu1  ;;  %v1074_v27 = vadd.f32 %v3540_v43, %v1073_v22 }
 0x296   : > { %v1085_v23 = vadd.f32 %v2678_v24, %v3540_v43  ;;  %v1076_v26 = vpop.f32.mrb[51].mxu1 }
 0x297   : > { %v1077_v28 = vadd.f32 %v3540_v43, %v1076_v26 }
 0x298   : > { %v1162_v29 = vpack.c.bf16 %v1085_v23, %v1082_v25 }
 0x299   : > { %v1161_v30 = vpack.c.bf16 %v1077_v28, %v1074_v27 }
 0x29b   : > { %v2681_v31 = vpop.f32.mrb[52].mxu1  ;;  %2723 = vmatprep.mubr.bf16.mxu1 %v1161_v30 }
 0x29c   : > { %v1089_v32 = vpop.f32.mrb[53].mxu1  ;;  %2724 = vmatmul.mubr.bf16.gmra.mrb[80].mxu1 %v1162_v29  ;;  %v1098_v34 = vadd.f32 %v2681_v31, %v3540_v43 }
 0x29d   : > { %v2682_v33 = vpop.f32.mrb[54].mxu1  ;;  %v1090_v37 = vadd.f32 %v3540_v43, %v1089_v32 }
 0x29e   : > { %v1101_v35 = vadd.f32 %v2682_v33, %v3540_v43  ;;  %v1092_v36 = vpop.f32.mrb[55].mxu1 }
 0x29f   : > { %v1093_v38 = vadd.f32 %v3540_v43, %v1092_v36 }
 0x2a0   : > { %v1164_v39 = vpack.c.bf16 %v1101_v35, %v1098_v34 }
 0x2a1   : > { %v1163_v40 = vpack.c.bf16 %v1093_v38, %v1090_v37 }
 0x2a3   : > { %v2685_v41 = vpop.f32.mrb[56].mxu1  ;;  %2727 = vmatprep.mubr.bf16.mxu1 %v1163_v40 }
 0x2a4   : > { %v1105_v42 = vpop.f32.mrb[57].mxu1  ;;  %2728 = vmatmul.mubr.bf16.gmra.mrb[84].mxu1 %v1164_v39  ;;  %v1114_v45 = vadd.f32 %v2685_v41, %v3540_v43 }
 0x2a5   : > { %v2686_v44 = vpop.f32.mrb[58].mxu1  ;;  %v1106_v48 = vadd.f32 %v3540_v43, %v1105_v42 }
 0x2a6   : > { %v1117_v46 = vadd.f32 %v2686_v44, %v3540_v43  ;;  %v1108_v47 = vpop.f32.mrb[59].mxu1 }
 0x2a7   : > { %v1109_v49 = vadd.f32 %v3540_v43, %v1108_v47 }
 0x2a8   : > { %v1166_v51 = vpack.c.bf16 %v1117_v46, %v1114_v45 }
 0x2a9   : > { %v1165_v52 = vpack.c.bf16 %v1109_v49, %v1106_v48 }
 0x2ab   : > { %v2689_v53 = vpop.f32.mrb[60].mxu1  ;;  %2731 = vmatprep.mubr.bf16.mxu1 %v1165_v52 }
 0x2ac   : > { %v1121_v54 = vpop.f32.mrb[61].mxu1  ;;  %2732 = vmatmul.mubr.bf16.gmra.mrb[88].mxu1 %v1166_v51  ;;  %v1130_v56 = vadd.f32 %v2689_v53, %v3540_v43 }
 0x2ad   : > { %v2690_v55 = vpop.f32.mrb[62].mxu1  ;;  %v1122_v59 = vadd.f32 %v3540_v43, %v1121_v54 }
 0x2ae   : > { %v1133_v57 = vadd.f32 %v2690_v55, %v3540_v43  ;;  %v1124_v58 = vpop.f32.mrb[63].mxu1 }
 0x2af   : > { %v1125_v60 = vadd.f32 %v3540_v43, %v1124_v58 }
 0x2b0   : > { %v1168_v61 = vpack.c.bf16 %v1133_v57, %v1130_v56 }
 0x2b1   : > { %v1167_v62 = vpack.c.bf16 %v1125_v60, %v1122_v59 }
 0x2b3   : > { %2735 = vmatprep.mubr.bf16.mxu1 %v1167_v62 }
 0x2b4   : > { %2736 = vmatmul.mubr.bf16.gmra.mrb[92].mxu1 %v1168_v61 }
 0x337   : > { %v2709_v63 = vpop.f32.mrb[64].mxu1 }
 0x338   : > { %v1257_v3 = vpop.f32.mrb[65].mxu1  ;;  %v1266_v5 = vadd.f32 %v2709_v63, %v3577_v1 }
 0x339   : > { %v2710_v4 = vpop.f32.mrb[66].mxu1  ;;  %v1258_v10 = vadd.f32 %v3577_v1, %v1257_v3 }
 0x33a   : > { %v1269_v7 = vadd.f32 %v2710_v4, %v3577_v1  ;;  %v1260_v9 = vpop.f32.mrb[67].mxu1 }
 0x33b   : > { %v1261_v43 = vadd.f32 %v3577_v1, %v1260_v9 }
 0x33c   : > { %v1402_v11 = vpack.c.bf16 %v1269_v7, %v1266_v5 }
 0x33d   : > { %v1401_v12 = vpack.c.bf16 %v1261_v43, %v1258_v10 }
 0x33f   : > { %1541 = vmatmul.mubr.bf16.vlgmr.msra.gmra.mrb[32].mxu0 %v1401_v12 }
 0x340   : > { %1550 = vmatprep.mubr.bf16.mxu0 %v3112_v0 }
 0x347   : > { %v2713_v13 = vpop.f32.mrb[68].mxu1  ;;  %1551 = vmatmul.mubr.bf16.gmra.mrb[36].mxu0 %v1402_v11 }
 0x348   : > { %v1273_v14 = vpop.f32.mrb[69].mxu1  ;;  %1560 = vmatprep.mubr.bf16.mxu0 %v3112_v0  ;;  %v1282_v16 = vadd.f32 %v2713_v13, %v3577_v1 }
 0x349   : > { %v2714_v15 = vpop.f32.mrb[70].mxu1  ;;  %v1274_v19 = vadd.f32 %v3577_v1, %v1273_v14 }
 0x34a   : > { %v1285_v17 = vadd.f32 %v2714_v15, %v3577_v1  ;;  %v1276_v18 = vpop.f32.mrb[71].mxu1 }
 0x34b   : > { %v1277_v20 = vadd.f32 %v3577_v1, %v1276_v18 }
 0x34c   : > { %v1404_v2 = vpack.c.bf16 %v1285_v17, %v1282_v16 }
 0x34d   : > { %v1403_v6 = vpack.c.bf16 %v1277_v20, %v1274_v19 }
 0x34f   : > { %1561 = vmatmul.mubr.bf16.gmra.mrb[40].mxu0 %v1403_v6 }
 0x350   : > { %1570 = vmatprep.mubr.bf16.mxu0 %v3112_v0 }
 0x357   : > { %v2717_v8 = vpop.f32.mrb[72].mxu1  ;;  %1571 = vmatmul.mubr.bf16.gmra.mrb[44].mxu0 %v1404_v2 }
 0x358   : > { %v1289_v21 = vpop.f32.mrb[73].mxu1  ;;  %1580 = vmatprep.mubr.bf16.mxu0 %v3112_v0  ;;  %v1298_v24 = vadd.f32 %v2717_v8, %v3577_v1  ;;  %v1400_v8 = vld [vmem:[%s4338_s7] sm:$0x3] }
 0x359   : > { %v2718_v22 = vpop.f32.mrb[74].mxu1  ;;  %v1290_v26 = vadd.f32 %v3577_v1, %v1289_v21 }
 0x35a   : > { %v1301_v25 = vadd.f32 %v2718_v22, %v3577_v1  ;;  %v1292_v23 = vpop.f32.mrb[75].mxu1 }
 0x35b   : > { %v1293_v27 = vadd.f32 %v3577_v1, %v1292_v23 }
 0x35c   : > { %v1406_v28 = vpack.c.bf16 %v1301_v25, %v1298_v24 }
 0x35d   : > { %v1405_v29 = vpack.c.bf16 %v1293_v27, %v1290_v26 }
 0x35f   : > { %1581 = vmatmul.mubr.bf16.gmra.mrb[48].mxu0 %v1405_v29 }
 0x360   : > { %1590 = vmatprep.mubr.bf16.mxu0 %v3112_v0 }
 0x367   : > { %v2721_v30 = vpop.f32.mrb[76].mxu1  ;;  %1591 = vmatmul.mubr.bf16.gmra.mrb[52].mxu0 %v1406_v28 }
 0x368   : > { %v1305_v31 = vpop.f32.mrb[77].mxu1  ;;  %1600 = vmatprep.mubr.bf16.mxu0 %v3112_v0  ;;  %v1314_v33 = vadd.f32 %v2721_v30, %v3577_v1 }
 0x369   : > { %v2722_v32 = vpop.f32.mrb[78].mxu1  ;;  %v1306_v36 = vadd.f32 %v3577_v1, %v1305_v31 }
 0x36a   : > { %v1317_v34 = vadd.f32 %v2722_v32, %v3577_v1  ;;  %v1308_v35 = vpop.f32.mrb[79].mxu1 }
 0x36b   : > { %v1309_v37 = vadd.f32 %v3577_v1, %v1308_v35 }
 0x36c   : > { %v1408_v38 = vpack.c.bf16 %v1317_v34, %v1314_v33 }
 0x36d   : > { %v1407_v39 = vpack.c.bf16 %v1309_v37, %v1306_v36 }
 0x36f   : > { %v2725_v40 = vpop.f32.mrb[80].mxu1  ;;  %1601 = vmatmul.mubr.bf16.gmra.mrb[56].mxu0 %v1407_v39 }
 0x370   : > { %v1321_v41 = vpop.f32.mrb[81].mxu1  ;;  %1610 = vmatprep.mubr.bf16.mxu0 %v3112_v0  ;;  %v1330_v44 = vadd.f32 %v2725_v40, %v3577_v1 }
 0x371   : > { %v2726_v42 = vpop.f32.mrb[82].mxu1  ;;  %v1322_v47 = vadd.f32 %v3577_v1, %v1321_v41 }
 0x372   : > { %v1333_v45 = vadd.f32 %v2726_v42, %v3577_v1  ;;  %v1324_v46 = vpop.f32.mrb[83].mxu1 }
 0x373   : > { %v1325_v48 = vadd.f32 %v3577_v1, %v1324_v46 }
 0x374   : > { %v1410_v49 = vpack.c.bf16 %v1333_v45, %v1330_v44 }
 0x375   : > { %v1409_v51 = vpack.c.bf16 %v1325_v48, %v1322_v47 }
 0x377   : > { %v2729_v52 = vpop.f32.mrb[84].mxu1  ;;  %1611 = vmatmul.mubr.bf16.gmra.mrb[60].mxu0 %v1408_v38 }
 0x378   : > { %v1337_v53 = vpop.f32.mrb[85].mxu1  ;;  %1620 = vmatprep.mubr.bf16.mxu0 %v3112_v0  ;;  %v1346_v55 = vadd.f32 %v2729_v52, %v3577_v1 }
 0x379   : > { %v2730_v54 = vpop.f32.mrb[86].mxu1  ;;  %v1338_v58 = vadd.f32 %v3577_v1, %v1337_v53 }
 0x37a   : > { %v1349_v56 = vadd.f32 %v2730_v54, %v3577_v1  ;;  %v1340_v57 = vpop.f32.mrb[87].mxu1 }
 0x37b   : > { %v1341_v59 = vadd.f32 %v3577_v1, %v1340_v57 }
 0x37c   : > { %v1412_v60 = vpack.c.bf16 %v1349_v56, %v1346_v55 }
 0x37d   : > { %v1411_v61 = vpack.c.bf16 %v1341_v59, %v1338_v58 }
 0x37f   : > { %v2733_v62 = vpop.f32.mrb[88].mxu1  ;;  %1621 = vmatmul.mubr.bf16.gmra.mrb[64].mxu0 %v1409_v51 }
 0x380   : > { %v1353_v63 = vpop.f32.mrb[89].mxu1  ;;  %1630 = vmatprep.mubr.bf16.mxu0 %v3112_v0  ;;  %v1362_v4 = vadd.f32 %v2733_v62, %v3577_v1 }
 0x381   : > { %v2734_v3 = vpop.f32.mrb[90].mxu1  ;;  %v1354_v9 = vadd.f32 %v3577_v1, %v1353_v63 }
 0x382   : > { %v1365_v5 = vadd.f32 %v2734_v3, %v3577_v1  ;;  %v1356_v7 = vpop.f32.mrb[91].mxu1 }
 0x383   : > { %v1357_v10 = vadd.f32 %v3577_v1, %v1356_v7 }
 0x384   : > { %v1414_v43 = vpack.c.bf16 %v1365_v5, %v1362_v4 }
 0x385   : > { %v1413_v11 = vpack.c.bf16 %v1357_v10, %v1354_v9 }
 0x387   : > { %v2737_v12 = vpop.f32.mrb[92].mxu1  ;;  %1631 = vmatmul.mubr.bf16.gmra.mrb[68].mxu0 %v1410_v49 }
 0x388   : > { %v1369_v13 = vpop.f32.mrb[93].mxu1  ;;  %1640 = vmatprep.mubr.bf16.mxu0 %v3112_v0  ;;  %v1378_v15 = vadd.f32 %v2737_v12, %v3577_v1 }
 0x389   : > { %v2738_v14 = vpop.f32.mrb[94].mxu1  ;;  %v1370_v18 = vadd.f32 %v3577_v1, %v1369_v13 }
 0x38a   : > { %v1381_v16 = vadd.f32 %v2738_v14, %v3577_v1  ;;  %v1372_v17 = vpop.f32.mrb[95].mxu1 }
 0x38b   : > { %v1373_v19 = vadd.f32 %v3577_v1, %v1372_v17  ;;  %v1419_v1 = vshrl.u32 %v340_v50, 7 }
 0x38c   : > { %v1416_v20 = vpack.c.bf16 %v1381_v16, %v1378_v15 }
 0x38d   : > { %v1415_v2 = vpack.c.bf16 %v1373_v19, %v1370_v18  ;;  %v1420_v6 = vsub.s32 0, %v1419_v1  ;;  %v1424_v21 = vsub.s32 1, %v1419_v1 }
 0x38f   : > { %1641 = vmatmul.mubr.bf16.gmra.mrb[72].mxu0 %v1411_v61  ;;  %v3630_v22 = vrot.slane %v1400_v8, %v1420_v6  ;;  %v3632_v24 = vrot.slane %v1400_v8, %v1424_v21 }
 0x390   : > { %1650 = vmatprep.mubr.bf16.mxu0 %v3112_v0 }
 0x397   : > { %1651 = vmatmul.mubr.bf16.gmra.mrb[76].mxu0 %v1412_v60 }
 0x398   : > { %1660 = vmatprep.mubr.bf16.mxu0 %v3112_v0 }
 0x39f   : > { %1661 = vmatmul.mubr.bf16.gmra.mrb[80].mxu0 %v1413_v11 }
 0x3a0   : > { %1670 = vmatprep.mubr.bf16.mxu0 %v3112_v0 }
 0x3a7   : > { %1671 = vmatmul.mubr.bf16.gmra.mrb[84].mxu0 %v1414_v43 }
 0x3a8   : > { %1680 = vmatprep.mubr.bf16.mxu0 %v3112_v0 }
 0x3af   : > { %1681 = vmatmul.mubr.bf16.gmra.mrb[88].mxu0 %v1415_v2 }
 0x3b0   : > { %1690 = vmatprep.mubr.bf16.mxu0 %v3112_v0 }
 0x3b7   : > { %1691 = vmatmul.mubr.bf16.gmra.mrb[92].mxu0 %v1416_v20 }
 0x412   : > { %v1542_v25 = vpop.f32.mrb[32].mxu0 }
 0x413   : > { %v3635_v23 = vadd.f32 %v1542_v25, %v3630_v22  ;;  %v1544_v26 = vpop.f32.mrb[33].mxu0 }
 0x414   : > { %v3638_v0 = vadd.f32 %v1544_v26, %v3632_v24  ;;  %v1546_v27 = vpop.f32.mrb[34].mxu0 }
 0x415   : > { %v3641_v50 = vadd.f32 %v1546_v27, %v3630_v22  ;;  %v1548_v28 = vpop.f32.mrb[35].mxu0 }
 0x416   : > { %v3644_v29 = vadd.f32 %v1548_v28, %v3632_v24  ;;  %v1701_v30 = vmax.f32 %v3635_v23, %v3638_v0 }
 0x418   : > { %1702 = vmax.xlane.f32.xlu0 %v1701_v30  ;;  %v1704_v31 = vmax.f32 %v3641_v50, %v3644_v29 }
 0x41a   : > { %v1552_v32 = vpop.f32.mrb[36].mxu0  ;;  %1705 = vmax.xlane.f32.xlu1 %v1704_v31 }
 0x41b   : > { %v3651_v33 = vadd.f32 %v1552_v32, %v3630_v22  ;;  %v1554_v34 = vpop.f32.mrb[37].mxu0 }
 0x41c   : > { %v3654_v35 = vadd.f32 %v1554_v34, %v3632_v24  ;;  %v1556_v36 = vpop.f32.mrb[38].mxu0 }
 0x41d   : > { %v1558_v37 = vpop.f32.mrb[39].mxu0  ;;  %v3657_v38 = vadd.f32 %v1556_v36, %v3630_v22 }
 0x41e   : > { %v3660_v39 = vadd.f32 %v1558_v37, %v3632_v24  ;;  %v1707_v40 = vmax.f32 %v3651_v33, %v3654_v35 }
 0x420   : > { %1708 = vmax.xlane.f32.xlu0 %v1707_v40  ;;  %v1710_v42 = vmax.f32 %v3657_v38, %v3660_v39 }
 0x422   : > { %v1562_v41 = vpop.f32.mrb[40].mxu0 }
 0x423   : > { %v3667_v44 = vadd.f32 %v1562_v41, %v3630_v22  ;;  %v1564_v45 = vpop.f32.mrb[41].mxu0 }
 0x424   : > { %v3670_v46 = vadd.f32 %v1564_v45, %v3632_v24  ;;  %v1566_v47 = vpop.f32.mrb[42].mxu0  ;;  %1711 = vmax.xlane.f32.xlu0 %v1710_v42 }
 0x425   : > { %v3673_v48 = vadd.f32 %v1566_v47, %v3630_v22  ;;  %v1568_v49 = vpop.f32.mrb[43].mxu0 }
 0x426   : > { %v3676_v51 = vadd.f32 %v1568_v49, %v3632_v24  ;;  %v1713_v52 = vmax.f32 %v3667_v44, %v3670_v46 }
 0x428   : > { %1714 = vmax.xlane.f32.xlu1 %v1713_v52  ;;  %v1716_v53 = vmax.f32 %v3673_v48, %v3676_v51 }
 0x42a   : > { %v1572_v54 = vpop.f32.mrb[44].mxu0  ;;  %1717 = vmax.xlane.f32.xlu0 %v1716_v53 }
 0x42b   : > { %v3683_v55 = vadd.f32 %v1572_v54, %v3630_v22  ;;  %v1574_v56 = vpop.f32.mrb[45].mxu0 }
 0x42c   : > { %v3686_v57 = vadd.f32 %v1574_v56, %v3632_v24  ;;  %v1576_v58 = vpop.f32.mrb[46].mxu0 }
 0x42d   : > { %v3689_v59 = vadd.f32 %v1576_v58, %v3630_v22  ;;  %v1578_v60 = vpop.f32.mrb[47].mxu0 }
 0x42e   : > { %v3692_v61 = vadd.f32 %v1578_v60, %v3632_v24  ;;  %v1719_v62 = vmax.f32 %v3683_v55, %v3686_v57 }
 0x430   : > { %1720 = vmax.xlane.f32.xlu1 %v1719_v62  ;;  %v1722_v63 = vmax.f32 %v3689_v59, %v3692_v61 }
 0x432   : > { %v1582_v3 = vpop.f32.mrb[48].mxu0  ;;  %1723 = vmax.xlane.f32.xlu0 %v1722_v63 }
 0x433   : > { %v3699_v4 = vadd.f32 %v1582_v3, %v3630_v22  ;;  %v1584_v5 = vpop.f32.mrb[49].mxu0 }
 0x434   : > { %v3702_v7 = vadd.f32 %v1584_v5, %v3632_v24  ;;  %v1586_v9 = vpop.f32.mrb[50].mxu0 }
 0x435   : > { %v3705_v10 = vadd.f32 %v1586_v9, %v3630_v22  ;;  %v1588_v43 = vpop.f32.mrb[51].mxu0 }
 0x436   : > { %v3708_v11 = vadd.f32 %v1588_v43, %v3632_v24  ;;  %v1725_v12 = vmax.f32 %v3699_v4, %v3702_v7 }
 0x438   : > { %1726 = vmax.xlane.f32.xlu1 %v1725_v12  ;;  %v1728_v13 = vmax.f32 %v3705_v10, %v3708_v11 }
 0x43a   : > { %v1592_v14 = vpop.f32.mrb[52].mxu0  ;;  %1729 = vmax.xlane.f32.xlu0 %v1728_v13 }
 0x43b   : > { %v3715_v15 = vadd.f32 %v1592_v14, %v3630_v22  ;;  %v1594_v16 = vpop.f32.mrb[53].mxu0 }
 0x43c   : > { %v3718_v17 = vadd.f32 %v1594_v16, %v3632_v24  ;;  %v1596_v18 = vpop.f32.mrb[54].mxu0 }
 0x43d   : > { %v3721_v19 = vadd.f32 %v1596_v18, %v3630_v22  ;;  %v1598_v20 = vpop.f32.mrb[55].mxu0 }
 0x43e   : > { %v3724_v2 = vadd.f32 %v1598_v20, %v3632_v24  ;;  %v1731_v1 = vmax.f32 %v3715_v15, %v3718_v17 }
 0x440   : > { %1732 = vmax.xlane.f32.xlu1 %v1731_v1  ;;  %v1734_v6 = vmax.f32 %v3721_v19, %v3724_v2 }
 0x442   : > { %v1602_v8 = vpop.f32.mrb[56].mxu0  ;;  %1735 = vmax.xlane.f32.xlu0 %v1734_v6 }
 0x443   : > { %v3731_v21 = vadd.f32 %v1602_v8, %v3630_v22  ;;  %v1604_v25 = vpop.f32.mrb[57].mxu0 }
 0x444   : > { %v3734_v26 = vadd.f32 %v1604_v25, %v3632_v24  ;;  %v1606_v27 = vpop.f32.mrb[58].mxu0 }
 0x445   : > { %v3737_v28 = vadd.f32 %v1606_v27, %v3630_v22  ;;  %v1608_v30 = vpop.f32.mrb[59].mxu0 }
 0x446   : > { %v3740_v31 = vadd.f32 %v1608_v30, %v3632_v24  ;;  %v1737_v32 = vmax.f32 %v3731_v21, %v3734_v26 }
 0x448   : > { %1738 = vmax.xlane.f32.xlu1 %v1737_v32  ;;  %v1740_v34 = vmax.f32 %v3737_v28, %v3740_v31 }
 0x44a   : > { %v1612_v36 = vpop.f32.mrb[60].mxu0  ;;  %1741 = vmax.xlane.f32.xlu0 %v1740_v34 }
 0x44b   : > { %v3747_v37 = vadd.f32 %v1612_v36, %v3630_v22  ;;  %v1614_v40 = vpop.f32.mrb[61].mxu0 }
 0x44c   : > { %v3750_v41 = vadd.f32 %v1614_v40, %v3632_v24  ;;  %v1616_v42 = vpop.f32.mrb[62].mxu0 }
 0x44d   : > { %v3753_v45 = vadd.f32 %v1616_v42, %v3630_v22  ;;  %v1618_v47 = vpop.f32.mrb[63].mxu0 }
 0x44e   : > { %v3756_v49 = vadd.f32 %v1618_v47, %v3632_v24  ;;  %v1743_v52 = vmax.f32 %v3747_v37, %v3750_v41 }
 0x450   : > { %1744 = vmax.xlane.f32.xlu1 %v1743_v52  ;;  %v1746_v53 = vmax.f32 %v3753_v45, %v3756_v49 }
 0x452   : > { %v1622_v54 = vpop.f32.mrb[64].mxu0  ;;  %1747 = vmax.xlane.f32.xlu0 %v1746_v53 }
 0x453   : > { %v3763_v56 = vadd.f32 %v1622_v54, %v3630_v22  ;;  %v1624_v58 = vpop.f32.mrb[65].mxu0 }
 0x454   : > { %v3766_v60 = vadd.f32 %v1624_v58, %v3632_v24  ;;  %v1626_v62 = vpop.f32.mrb[66].mxu0 }
 0x455   : > { %v3769_v63 = vadd.f32 %v1626_v62, %v3630_v22  ;;  %v1628_v3 = vpop.f32.mrb[67].mxu0 }
 0x456   : > { %v3772_v5 = vadd.f32 %v1628_v3, %v3632_v24  ;;  %v1749_v9 = vmax.f32 %v3763_v56, %v3766_v60 }
 0x458   : > { %1750 = vmax.xlane.f32.xlu1 %v1749_v9  ;;  %v1752_v43 = vmax.f32 %v3769_v63, %v3772_v5 }
 0x45a   : > { %v1632_v12 = vpop.f32.mrb[68].mxu0  ;;  %1753 = vmax.xlane.f32.xlu0 %v1752_v43 }
 0x45b   : > { %v3779_v13 = vadd.f32 %v1632_v12, %v3630_v22  ;;  %v1634_v14 = vpop.f32.mrb[69].mxu0 }
 0x45c   : > { %v3782_v16 = vadd.f32 %v1634_v14, %v3632_v24  ;;  %v1636_v18 = vpop.f32.mrb[70].mxu0 }
 0x45d   : > { %v3785_v20 = vadd.f32 %v1636_v18, %v3630_v22  ;;  %v1638_v1 = vpop.f32.mrb[71].mxu0 }
 0x45e   : > { %v3788_v6 = vadd.f32 %v1638_v1, %v3632_v24  ;;  %v1755_v8 = vmax.f32 %v3779_v13, %v3782_v16 }
 0x460   : > { %1756 = vmax.xlane.f32.xlu1 %v1755_v8  ;;  %v1758_v25 = vmax.f32 %v3785_v20, %v3788_v6 }
 0x462   : > { %v1642_v27 = vpop.f32.mrb[72].mxu0  ;;  %1759 = vmax.xlane.f32.xlu0 %v1758_v25 }
 0x463   : > { %v3795_v30 = vadd.f32 %v1642_v27, %v3630_v22  ;;  %v1644_v32 = vpop.f32.mrb[73].mxu0 }
 0x464   : > { %v3798_v34 = vadd.f32 %v1644_v32, %v3632_v24  ;;  %v1646_v36 = vpop.f32.mrb[74].mxu0 }
 0x465   : > { %v3801_v40 = vadd.f32 %v1646_v36, %v3630_v22  ;;  %v1648_v42 = vpop.f32.mrb[75].mxu0 }
 0x466   : > { %v3804_v47 = vadd.f32 %v1648_v42, %v3632_v24  ;;  %v1761_v52 = vmax.f32 %v3795_v30, %v3798_v34 }
 0x468   : > { %1762 = vmax.xlane.f32.xlu1 %v1761_v52  ;;  %v1764_v53 = vmax.f32 %v3801_v40, %v3804_v47 }
 0x46a   : > { %v1652_v54 = vpop.f32.mrb[76].mxu0  ;;  %1765 = vmax.xlane.f32.xlu0 %v1764_v53 }
 0x46b   : > { %v3811_v58 = vadd.f32 %v1652_v54, %v3630_v22  ;;  %v1654_v62 = vpop.f32.mrb[77].mxu0 }
 0x46c   : > { %v3814_v3 = vadd.f32 %v1654_v62, %v3632_v24  ;;  %v1656_v9 = vpop.f32.mrb[78].mxu0 }
 0x46d   : > { %v3817_v43 = vadd.f32 %v1656_v9, %v3630_v22  ;;  %v1658_v12 = vpop.f32.mrb[79].mxu0 }
 0x46e   : > { %v3820_v14 = vadd.f32 %v1658_v12, %v3632_v24  ;;  %v1767_v18 = vmax.f32 %v3811_v58, %v3814_v3 }
 0x470   : > { %1768 = vmax.xlane.f32.xlu1 %v1767_v18  ;;  %v1770_v1 = vmax.f32 %v3817_v43, %v3820_v14 }
 0x472   : > { %v1662_v8 = vpop.f32.mrb[80].mxu0  ;;  %1771 = vmax.xlane.f32.xlu0 %v1770_v1 }
 0x473   : > { %v3827_v25 = vadd.f32 %v1662_v8, %v3630_v22  ;;  %v1664_v27 = vpop.f32.mrb[81].mxu0 }
 0x474   : > { %v3830_v32 = vadd.f32 %v1664_v27, %v3632_v24  ;;  %v1666_v36 = vpop.f32.mrb[82].mxu0 }
 0x475   : > { %v3833_v42 = vadd.f32 %v1666_v36, %v3630_v22  ;;  %v1668_v52 = vpop.f32.mrb[83].mxu0 }
 0x476   : > { %4366 = vst [vmem:[#allocation5_spill] sm:$0xff] %v3830_v32  ;;  %v3836_v53 = vadd.f32 %v1668_v52, %v3632_v24  ;;  %v1773_v54 = vmax.f32 %v3827_v25, %v3830_v32 }
 0x477   : > { %4367 = vst [vmem:[#allocation6_spill] sm:$0xff] %v3833_v42 }
 0x478   : > { %4368 = vst [vmem:[#allocation7_spill] sm:$0xff] %v3836_v53  ;;  %1774 = vmax.xlane.f32.xlu1 %v1773_v54  ;;  %v1776_v62 = vmax.f32 %v3833_v42, %v3836_v53 }
 0x47a   : > { %v1672_v9 = vpop.f32.mrb[84].mxu0  ;;  %1777 = vmax.xlane.f32.xlu0 %v1776_v62 }
 0x47b   : > { %v3843_v12 = vadd.f32 %v1672_v9, %v3630_v22  ;;  %v1674_v18 = vpop.f32.mrb[85].mxu0 }
 0x47c   : > { %v3846_v1 = vadd.f32 %v1674_v18, %v3632_v24  ;;  %v1676_v8 = vpop.f32.mrb[86].mxu0 }
 0x47d   : > { %4369 = vst [vmem:[#allocation8_spill] sm:$0xff] %v3843_v12  ;;  %v3849_v27 = vadd.f32 %v1676_v8, %v3630_v22  ;;  %v1678_v36 = vpop.f32.mrb[87].mxu0 }
 0x47e   : > { %4370 = vst [vmem:[#allocation9_spill] sm:$0xff] %v3846_v1  ;;  %v3852_v52 = vadd.f32 %v1678_v36, %v3632_v24  ;;  %v1779_v54 = vmax.f32 %v3843_v12, %v3846_v1 }
 0x47f   : > { %4371 = vst [vmem:[#allocation10_spill] sm:$0xff] %v3849_v27 }
 0x480   : > { %4372 = vst [vmem:[#allocation11_spill] sm:$0xff] %v3852_v52  ;;  %1780 = vmax.xlane.f32.xlu1 %v1779_v54  ;;  %v1782_v62 = vmax.f32 %v3849_v27, %v3852_v52 }
 0x482   : > { %1783 = vmax.xlane.f32.xlu0 %v1782_v62  ;;  %v1682_v9 = vpop.f32.mrb[88].mxu0 }
 0x483   : > { %v3859_v18 = vadd.f32 %v1682_v9, %v3630_v22  ;;  %v1684_v53 = vpop.f32.mrb[89].mxu0 }
 0x484   : > { %v3862_v8 = vadd.f32 %v1684_v53, %v3632_v24  ;;  %v1686_v42 = vpop.f32.mrb[90].mxu0 }
 0x485   : > { %v3865_v36 = vadd.f32 %v1686_v42, %v3630_v22  ;;  %v1688_v32 = vpop.f32.mrb[91].mxu0 }
 0x486   : > { %4373 = vst [vmem:[#allocation12_spill] sm:$0xff] %v3862_v8  ;;  %v3868_v1 = vadd.f32 %v1688_v32, %v3632_v24  ;;  %v1785_v54 = vmax.f32 %v3859_v18, %v3862_v8 }
 0x488   : > { %4374 = vst [vmem:[#allocation13_spill] sm:$0xff] %v3868_v1  ;;  %1786 = vmax.xlane.f32.xlu1 %v1785_v54  ;;  %v1788_v62 = vmax.f32 %v3865_v36, %v3868_v1 }
 0x48a   : > { %v1692_v9 = vpop.f32.mrb[92].mxu0  ;;  %1789 = vmax.xlane.f32.xlu0 %v1788_v62 }
 0x48b   : > { %v3875_v53 = vadd.f32 %v1692_v9, %v3630_v22  ;;  %v1694_v52 = vpop.f32.mrb[93].mxu0 }
 0x48c   : > { %v3878_v42 = vadd.f32 %v1694_v52, %v3632_v24  ;;  %v1696_v27 = vpop.f32.mrb[94].mxu0 }
 0x48d   : > { %v3881_v32 = vadd.f32 %v1696_v27, %v3630_v22  ;;  %v1698_v12 = vpop.f32.mrb[95].mxu0 }
 0x48e   : > { %v3884_v8 = vadd.f32 %v1698_v12, %v3632_v24  ;;  %v1791_v54 = vmax.f32 %v3875_v53, %v3878_v42 }
 0x490   : > { %1792 = vmax.xlane.f32.xlu1 %v1791_v54  ;;  %v1794_v62 = vmax.f32 %v3881_v32, %v3884_v8 }
 0x492   : > { %1795 = vmax.xlane.f32.xlu0 %v1794_v62 }
 0x4a5   : > { %v1703_v9 = vpop.xlane.xlu0 %1702 }
 0x4a6   : > { %v3891_v52 = vsub.f32 %v3635_v23, %v1703_v9  ;;  %v3894_v1 = vsub.f32 %v3638_v0, %v1703_v9 }
 0x4a7   : > { %v1706_v22 = vpop.xlane.xlu1 %1705 }
 0x4a8   : > { %4375 = vst [vmem:[#allocation14_spill] sm:$0xff] %v3894_v1  ;;  %v1861_v27 = vmul.f32 1.442695, %v3891_v52  ;;  %v1863_v24 = vmul.f32 1.442695, %v3894_v1  ;;  %v3899_v12 = vsub.f32 %v3641_v50, %v1706_v22  ;;  %v3902_v54 = vsub.f32 %v3644_v29, %v1706_v22 }
 0x4aa   : > { %4376 = vst [vmem:[#allocation15_spill] sm:$0xff] %v3902_v54  ;;  %2856 = vpow2.f32 %v1861_v27  ;;  %v1865_v62 = vmul.f32 1.442695, %v3899_v12  ;;  %v1867_v23 = vmul.f32 1.442695, %v3902_v54 }
 0x4ab   : > { %2858 = vpow2.f32 %v1863_v24 }
 0x4ac   : > { %2860 = vpow2.f32 %v1865_v62 }
 0x4ad   : > { %2862 = vpow2.f32 %v1867_v23  ;;  %v1709_v0 = vpop.xlane.xlu0 %1708 }
 0x4ae   : > { %v3907_v9 = vsub.f32 %v3651_v33, %v1709_v0  ;;  %v3910_v1 = vsub.f32 %v3654_v35, %v1709_v0 }
 0x4b0   : > { %4377 = vst [vmem:[#allocation16_spill] sm:$0xff] %v3907_v9  ;;  %4378 = vst [vmem:[#allocation17_spill] sm:$0xff] %v3910_v1  ;;  %v1869_v50 = vmul.f32 1.442695, %v3907_v9  ;;  %v1871_v29 = vmul.f32 1.442695, %v3910_v1 }
 0x4b1   : > { %v1712_v22 = vpop.xlane.xlu0 %1711 }
 0x4b2   : > { %2864 = vpow2.f32 %v1869_v50  ;;  %v3915_v27 = vsub.f32 %v3657_v38, %v1712_v22  ;;  %v3918_v24 = vsub.f32 %v3660_v39, %v1712_v22 }
 0x4b3   : > { %2866 = vpow2.f32 %v1871_v29 }
 0x4b4   : > { %4379 = vst [vmem:[#allocation18_spill] sm:$0xff] %v3915_v27  ;;  %4380 = vst [vmem:[#allocation19_spill] sm:$0xff] %v3918_v24  ;;  %v2857_v62 = vpop.eup %2856  ;;  %v1873_v33 = vmul.f32 1.442695, %v3915_v27  ;;  %v1875_v23 = vmul.f32 1.442695, %v3918_v24 }
 0x4b5   : > { %v2859_v35 = vpop.eup %2858  ;;  %v1715_v0 = vpop.xlane.xlu1 %1714 }
 0x4b6   : > { %v2861_v54 = vpop.eup %2860  ;;  %2868 = vpow2.f32 %v1873_v33  ;;  %v3923_v1 = vsub.f32 %v3667_v44, %v1715_v0  ;;  %v3926_v50 = vsub.f32 %v3670_v46, %v1715_v0  ;;  %v1989_v38 = vadd.f32 %v2859_v35, %v2857_v62 }
 0x4b7   : > { %v2863_v9 = vpop.eup %2862  ;;  %2870 = vpow2.f32 %v1875_v23  ;;  %v1718_v39 = vpop.xlane.xlu0 %1717 }
 0x4b8   : > { %v1877_v29 = vmul.f32 1.442695, %v3923_v1  ;;  %v1879_v22 = vmul.f32 1.442695, %v3926_v50  ;;  %v3931_v24 = vsub.f32 %v3673_v48, %v1718_v39  ;;  %v3934_v27 = vsub.f32 %v3676_v51, %v1718_v39  ;;  %1990 = vadd.xlane.f32.xlu1 %v1989_v38 }
 0x4b9   : > { %v1992_v44 = vadd.f32 %v2863_v9, %v2861_v54 }
 0x4ba   : > { %2872 = vpow2.f32 %v1877_v29  ;;  %v1881_v46 = vmul.f32 1.442695, %v3931_v24  ;;  %v1883_v62 = vmul.f32 1.442695, %v3934_v27 }
 0x4bb   : > { %2874 = vpow2.f32 %v1879_v22  ;;  %1993 = vadd.xlane.f32.xlu0 %v1992_v44 }
 0x4bc   : > { %v2865_v33 = vpop.eup %2864  ;;  %2876 = vpow2.f32 %v1881_v46 }
 0x4bd   : > { %v2867_v23 = vpop.eup %2866  ;;  %2878 = vpow2.f32 %v1883_v62  ;;  %v1721_v35 = vpop.xlane.xlu1 %1720 }
 0x4be   : > { %v3939_v48 = vsub.f32 %v3683_v55, %v1721_v35  ;;  %v3942_v51 = vsub.f32 %v3686_v57, %v1721_v35  ;;  %v1995_v0 = vadd.f32 %v2867_v23, %v2865_v33 }
 0x4bf   : > { %v1724_v54 = vpop.xlane.xlu0 %1723 }
 0x4c0   : > { %v2869_v9 = vpop.eup %2868  ;;  %v1885_v38 = vmul.f32 1.442695, %v3939_v48  ;;  %v1887_v39 = vmul.f32 1.442695, %v3942_v51  ;;  %v3947_v29 = vsub.f32 %v3689_v59, %v1724_v54  ;;  %v3950_v22 = vsub.f32 %v3692_v61, %v1724_v54  ;;  %1996 = vadd.xlane.f32.xlu1 %v1995_v0 }
 0x4c1   : > { %v2871_v44 = vpop.eup %2870 }
 0x4c2   : > { %4381 = vst [vmem:[#allocation20_spill] sm:$0xff] %v3950_v22  ;;  %2880 = vpow2.f32 %v1885_v38  ;;  %v1889_v55 = vmul.f32 1.442695, %v3947_v29  ;;  %v1891_v57 = vmul.f32 1.442695, %v3950_v22  ;;  %v1998_v46 = vadd.f32 %v2871_v44, %v2869_v9 }
 0x4c3   : > { %2882 = vpow2.f32 %v1887_v39 }
 0x4c4   : > { %v2873_v62 = vpop.eup %2872  ;;  %2884 = vpow2.f32 %v1889_v55  ;;  %1999 = vadd.xlane.f32.xlu0 %v1998_v46 }
 0x4c5   : > { %v2875_v33 = vpop.eup %2874  ;;  %2886 = vpow2.f32 %v1891_v57  ;;  %v1727_v23 = vpop.xlane.xlu1 %1726 }
 0x4c6   : > { %v2877_v59 = vpop.eup %2876  ;;  %v3955_v35 = vsub.f32 %v3699_v4, %v1727_v23  ;;  %v3958_v61 = vsub.f32 %v3702_v7, %v1727_v23  ;;  %v2001_v0 = vadd.f32 %v2875_v33, %v2873_v62 }
 0x4c7   : > { %v2879_v54 = vpop.eup %2878  ;;  %v1730_v38 = vpop.xlane.xlu0 %1729 }
 0x4c8   : > { %v1893_v22 = vmul.f32 1.442695, %v3955_v35  ;;  %v1895_v9 = vmul.f32 1.442695, %v3958_v61  ;;  %v3963_v39 = vsub.f32 %v3705_v10, %v1730_v38  ;;  %v3966_v44 = vsub.f32 %v3708_v11, %v1730_v38  ;;  %2002 = vadd.xlane.f32.xlu1 %v2001_v0 }
 0x4c9   : > { %v2004_v55 = vadd.f32 %v2879_v54, %v2877_v59 }
 0x4ca   : > { %2888 = vpow2.f32 %v1893_v22  ;;  %v1897_v4 = vmul.f32 1.442695, %v3963_v39  ;;  %v1899_v7 = vmul.f32 1.442695, %v3966_v44 }
 0x4cb   : > { %2890 = vpow2.f32 %v1895_v9  ;;  %2005 = vadd.xlane.f32.xlu0 %v2004_v55 }
 0x4cc   : > { %v2881_v57 = vpop.eup %2880  ;;  %2892 = vpow2.f32 %v1897_v4 }
 0x4cd   : > { %v2883_v46 = vpop.eup %2882  ;;  %2894 = vpow2.f32 %v1899_v7  ;;  %v1733_v62 = vpop.xlane.xlu1 %1732 }
 0x4ce   : > { %v2885_v33 = vpop.eup %2884  ;;  %v3971_v10 = vsub.f32 %v3715_v15, %v1733_v62  ;;  %v3974_v11 = vsub.f32 %v3718_v17, %v1733_v62  ;;  %v2007_v23 = vadd.f32 %v2883_v46, %v2881_v57 }
 0x4cf   : > { %v2887_v22 = vpop.eup %2886  ;;  %v1736_v59 = vpop.xlane.xlu0 %1735 }
 0x4d0   : > { %v1901_v0 = vmul.f32 1.442695, %v3971_v10  ;;  %v1903_v54 = vmul.f32 1.442695, %v3974_v11  ;;  %v3979_v38 = vsub.f32 %v3721_v19, %v1736_v59  ;;  %v3982_v9 = vsub.f32 %v3724_v2, %v1736_v59  ;;  %2008 = vadd.xlane.f32.xlu1 %v2007_v23 }
 0x4d1   : > { %v2010_v55 = vadd.f32 %v2887_v22, %v2885_v33 }
 0x4d2   : > { %2896 = vpow2.f32 %v1901_v0  ;;  %v1905_v15 = vmul.f32 1.442695, %v3979_v38  ;;  %v1907_v17 = vmul.f32 1.442695, %v3982_v9 }
 0x4d3   : > { %2898 = vpow2.f32 %v1903_v54  ;;  %2011 = vadd.xlane.f32.xlu0 %v2010_v55 }
 0x4d4   : > { %v2889_v4 = vpop.eup %2888  ;;  %2900 = vpow2.f32 %v1905_v15 }
 0x4d5   : > { %v2891_v7 = vpop.eup %2890  ;;  %2902 = vpow2.f32 %v1907_v17  ;;  %v1739_v57 = vpop.xlane.xlu1 %1738 }
 0x4d6   : > { %v2893_v46 = vpop.eup %2892  ;;  %v3987_v19 = vsub.f32 %v3731_v21, %v1739_v57  ;;  %v3990_v2 = vsub.f32 %v3734_v26, %v1739_v57  ;;  %v2013_v62 = vadd.f32 %v2891_v7, %v2889_v4 }
 0x4d7   : > { %v2895_v33 = vpop.eup %2894  ;;  %v1742_v23 = vpop.xlane.xlu0 %1741 }
 0x4d8   : > { %v1909_v22 = vmul.f32 1.442695, %v3987_v19  ;;  %v1911_v59 = vmul.f32 1.442695, %v3990_v2  ;;  %v3995_v0 = vsub.f32 %v3737_v28, %v1742_v23  ;;  %v3998_v54 = vsub.f32 %v3740_v31, %v1742_v23  ;;  %2014 = vadd.xlane.f32.xlu1 %v2013_v62 }
 0x4d9   : > { %v2016_v55 = vadd.f32 %v2895_v33, %v2893_v46 }
 0x4da   : > { %2904 = vpow2.f32 %v1909_v22  ;;  %v1913_v21 = vmul.f32 1.442695, %v3995_v0  ;;  %v1915_v26 = vmul.f32 1.442695, %v3998_v54 }
 0x4db   : > { %2906 = vpow2.f32 %v1911_v59  ;;  %2017 = vadd.xlane.f32.xlu0 %v2016_v55 }
 0x4dc   : > { %v2897_v15 = vpop.eup %2896  ;;  %2908 = vpow2.f32 %v1913_v21 }
 0x4dd   : > { %v2899_v17 = vpop.eup %2898  ;;  %2910 = vpow2.f32 %v1915_v26  ;;  %v1745_v4 = vpop.xlane.xlu1 %1744 }
 0x4de   : > { %v2901_v7 = vpop.eup %2900  ;;  %v4003_v28 = vsub.f32 %v3747_v37, %v1745_v4  ;;  %v4006_v31 = vsub.f32 %v3750_v41, %v1745_v4  ;;  %v2019_v57 = vadd.f32 %v2899_v17, %v2897_v15 }
 0x4df   : > { %v2903_v46 = vpop.eup %2902  ;;  %v1748_v62 = vpop.xlane.xlu0 %1747 }
 0x4e0   : > { %v1917_v33 = vmul.f32 1.442695, %v4003_v28  ;;  %v1919_v23 = vmul.f32 1.442695, %v4006_v31  ;;  %v4011_v22 = vsub.f32 %v3753_v45, %v1748_v62  ;;  %v4014_v59 = vsub.f32 %v3756_v49, %v1748_v62  ;;  %2020 = vadd.xlane.f32.xlu1 %v2019_v57 }
 0x4e1   : > { %v2022_v55 = vadd.f32 %v2903_v46, %v2901_v7 }
 0x4e2   : > { %2912 = vpow2.f32 %v1917_v33  ;;  %v1921_v37 = vmul.f32 1.442695, %v4011_v22  ;;  %v1923_v41 = vmul.f32 1.442695, %v4014_v59 }
 0x4e3   : > { %2914 = vpow2.f32 %v1919_v23  ;;  %2023 = vadd.xlane.f32.xlu0 %v2022_v55 }
 0x4e4   : > { %v2905_v21 = vpop.eup %2904  ;;  %2916 = vpow2.f32 %v1921_v37 }
 0x4e5   : > { %v2907_v26 = vpop.eup %2906  ;;  %2918 = vpow2.f32 %v1923_v41  ;;  %v1751_v15 = vpop.xlane.xlu1 %1750 }
 0x4e6   : > { %v2909_v17 = vpop.eup %2908  ;;  %v4019_v45 = vsub.f32 %v3763_v56, %v1751_v15  ;;  %v4022_v49 = vsub.f32 %v3766_v60, %v1751_v15  ;;  %v2025_v4 = vadd.f32 %v2907_v26, %v2905_v21 }
 0x4e7   : > { %v2911_v7 = vpop.eup %2910  ;;  %v1754_v57 = vpop.xlane.xlu0 %1753 }
 0x4e8   : > { %v1925_v46 = vmul.f32 1.442695, %v4019_v45  ;;  %v1927_v62 = vmul.f32 1.442695, %v4022_v49  ;;  %v4027_v33 = vsub.f32 %v3769_v63, %v1754_v57  ;;  %v4030_v23 = vsub.f32 %v3772_v5, %v1754_v57  ;;  %2026 = vadd.xlane.f32.xlu1 %v2025_v4 }
 0x4e9   : > { %v2028_v55 = vadd.f32 %v2911_v7, %v2909_v17 }
 0x4ea   : > { %2920 = vpow2.f32 %v1925_v46  ;;  %v1929_v56 = vmul.f32 1.442695, %v4027_v33  ;;  %v1931_v60 = vmul.f32 1.442695, %v4030_v23 }
 0x4eb   : > { %2922 = vpow2.f32 %v1927_v62  ;;  %2029 = vadd.xlane.f32.xlu0 %v2028_v55 }
 0x4ec   : > { %v2913_v37 = vpop.eup %2912  ;;  %2924 = vpow2.f32 %v1929_v56 }
 0x4ed   : > { %v2915_v41 = vpop.eup %2914  ;;  %2926 = vpow2.f32 %v1931_v60  ;;  %v1757_v21 = vpop.xlane.xlu1 %1756 }
 0x4ee   : > { %v2917_v26 = vpop.eup %2916  ;;  %v4035_v63 = vsub.f32 %v3779_v13, %v1757_v21  ;;  %v4038_v5 = vsub.f32 %v3782_v16, %v1757_v21  ;;  %v2031_v15 = vadd.f32 %v2915_v41, %v2913_v37 }
 0x4ef   : > { %v2919_v17 = vpop.eup %2918  ;;  %v1760_v4 = vpop.xlane.xlu0 %1759 }
 0x4f0   : > { %v1933_v7 = vmul.f32 1.442695, %v4035_v63  ;;  %v1935_v57 = vmul.f32 1.442695, %v4038_v5  ;;  %v4043_v46 = vsub.f32 %v3785_v20, %v1760_v4  ;;  %v4046_v62 = vsub.f32 %v3788_v6, %v1760_v4  ;;  %2032 = vadd.xlane.f32.xlu1 %v2031_v15 }
 0x4f1   : > { %v2034_v55 = vadd.f32 %v2919_v17, %v2917_v26 }
 0x4f2   : > { %2928 = vpow2.f32 %v1933_v7  ;;  %v1937_v13 = vmul.f32 1.442695, %v4043_v46  ;;  %v1939_v16 = vmul.f32 1.442695, %v4046_v62 }
 0x4f3   : > { %2930 = vpow2.f32 %v1935_v57  ;;  %2035 = vadd.xlane.f32.xlu0 %v2034_v55 }
 0x4f4   : > { %v2921_v56 = vpop.eup %2920  ;;  %2932 = vpow2.f32 %v1937_v13 }
 0x4f5   : > { %v2923_v60 = vpop.eup %2922  ;;  %2934 = vpow2.f32 %v1939_v16  ;;  %v1763_v37 = vpop.xlane.xlu1 %1762 }
 0x4f6   : > { %v2925_v41 = vpop.eup %2924  ;;  %v4051_v20 = vsub.f32 %v3795_v30, %v1763_v37  ;;  %v4054_v6 = vsub.f32 %v3798_v34, %v1763_v37  ;;  %v2037_v21 = vadd.f32 %v2923_v60, %v2921_v56 }
 0x4f7   : > { %v2927_v26 = vpop.eup %2926  ;;  %v1766_v15 = vpop.xlane.xlu0 %1765 }
 0x4f8   : > { %v1941_v17 = vmul.f32 1.442695, %v4051_v20  ;;  %v1943_v4 = vmul.f32 1.442695, %v4054_v6  ;;  %v4059_v7 = vsub.f32 %v3801_v40, %v1766_v15  ;;  %v4062_v57 = vsub.f32 %v3804_v47, %v1766_v15  ;;  %2038 = vadd.xlane.f32.xlu1 %v2037_v21 }
 0x4f9   : > { %v2040_v55 = vadd.f32 %v2927_v26, %v2925_v41 }
 0x4fa   : > { %2936 = vpow2.f32 %v1941_v17  ;;  %v1945_v30 = vmul.f32 1.442695, %v4059_v7  ;;  %v1947_v34 = vmul.f32 1.442695, %v4062_v57 }
 0x4fb   : > { %2938 = vpow2.f32 %v1943_v4  ;;  %2041 = vadd.xlane.f32.xlu0 %v2040_v55 }
 0x4fc   : > { %v2929_v13 = vpop.eup %2928  ;;  %2940 = vpow2.f32 %v1945_v30 }
 0x4fd   : > { %v2931_v16 = vpop.eup %2930  ;;  %2942 = vpow2.f32 %v1947_v34  ;;  %v1769_v56 = vpop.xlane.xlu1 %1768 }
 0x4fe   : > { %v2933_v60 = vpop.eup %2932  ;;  %v4067_v40 = vsub.f32 %v3811_v58, %v1769_v56  ;;  %v4070_v47 = vsub.f32 %v3814_v3, %v1769_v56  ;;  %v2043_v37 = vadd.f32 %v2931_v16, %v2929_v13 }
 0x4ff   : > { %v2935_v41 = vpop.eup %2934  ;;  %v1772_v21 = vpop.xlane.xlu0 %1771 }
 0x500   : > { %v1949_v26 = vmul.f32 1.442695, %v4067_v40  ;;  %v1951_v15 = vmul.f32 1.442695, %v4070_v47  ;;  %v4075_v17 = vsub.f32 %v3817_v43, %v1772_v21  ;;  %v4078_v4 = vsub.f32 %v3820_v14, %v1772_v21  ;;  %2044 = vadd.xlane.f32.xlu1 %v2043_v37  ;;  %v4384_v14 = vld [vmem:[#allocation5_spill] sm:$0xff] }
 0x501   : > { %v2046_v55 = vadd.f32 %v2935_v41, %v2933_v60 }
 0x502   : > { %4382 = vst [vmem:[#allocation21_spill] sm:$0xff] %v4078_v4  ;;  %2944 = vpow2.f32 %v1949_v26  ;;  %v1953_v58 = vmul.f32 1.442695, %v4075_v17  ;;  %v1955_v3 = vmul.f32 1.442695, %v4078_v4 }
 0x503   : > { %2946 = vpow2.f32 %v1951_v15  ;;  %2047 = vadd.xlane.f32.xlu0 %v2046_v55  ;;  %v4386_v15 = vld [vmem:[#allocation6_spill] sm:$0xff] }
 0x504   : > { %v2937_v30 = vpop.eup %2936  ;;  %2948 = vpow2.f32 %v1953_v58  ;;  %v4388_v58 = vld [vmem:[#allocation7_spill] sm:$0xff] }
 0x505   : > { %v2939_v34 = vpop.eup %2938  ;;  %2950 = vpow2.f32 %v1955_v3  ;;  %v1775_v13 = vpop.xlane.xlu1 %1774 }
 0x506   : > { %v2941_v16 = vpop.eup %2940  ;;  %v4083_v43 = vsub.f32 %v3827_v25, %v1775_v13  ;;  %v4086_v56 = vsub.f32 %v4384_v14, %v1775_v13  ;;  %v2049_v60 = vadd.f32 %v2939_v34, %v2937_v30 }
 0x507   : > { %v2943_v37 = vpop.eup %2942  ;;  %v1778_v41 = vpop.xlane.xlu0 %1777 }
 0x508   : > { %4383 = vst [vmem:[#allocation22_spill] sm:$0xff] %v4083_v43  ;;  %4385 = vst [vmem:[#allocation5_spill] sm:$0xff] %v4086_v56  ;;  %v1957_v21 = vmul.f32 1.442695, %v4083_v43  ;;  %v1959_v26 = vmul.f32 1.442695, %v4086_v56  ;;  %v4091_v55 = vsub.f32 %v4386_v15, %v1778_v41  ;;  %v4094_v3 = vsub.f32 %v4388_v58, %v1778_v41  ;;  %2050 = vadd.xlane.f32.xlu1 %v2049_v60 }
 0x509   : > { %v2052_v4 = vadd.f32 %v2943_v37, %v2941_v16  ;;  %v4390_v15 = vld [vmem:[#allocation8_spill] sm:$0xff]  ;;  %v4391_v41 = vld [vmem:[#allocation9_spill] sm:$0xff] }
 0x50a   : > { %4387 = vst [vmem:[#allocation6_spill] sm:$0xff] %v4091_v55  ;;  %4389 = vst [vmem:[#allocation7_spill] sm:$0xff] %v4094_v3  ;;  %2952 = vpow2.f32 %v1957_v21  ;;  %v1961_v25 = vmul.f32 1.442695, %v4091_v55  ;;  %v1963_v13 = vmul.f32 1.442695, %v4094_v3 }
 0x50b   : > { %2954 = vpow2.f32 %v1959_v26  ;;  %2053 = vadd.xlane.f32.xlu0 %v2052_v4  ;;  %v4393_v4 = vld [vmem:[#allocation10_spill] sm:$0xff] }
 0x50c   : > { %v2945_v30 = vpop.eup %2944  ;;  %2956 = vpow2.f32 %v1961_v25  ;;  %v4394_v25 = vld [vmem:[#allocation11_spill] sm:$0xff] }
 0x50d   : > { %v2947_v34 = vpop.eup %2946  ;;  %2958 = vpow2.f32 %v1963_v13  ;;  %v1781_v14 = vpop.xlane.xlu1 %1780 }
 0x50e   : > { %v2949_v56 = vpop.eup %2948  ;;  %v4099_v43 = vsub.f32 %v4390_v15, %v1781_v14  ;;  %v4102_v58 = vsub.f32 %v4391_v41, %v1781_v14  ;;  %v2055_v16 = vadd.f32 %v2947_v34, %v2945_v30 }
 0x50f   : > { %v2951_v60 = vpop.eup %2950  ;;  %v1784_v37 = vpop.xlane.xlu0 %1783 }
 0x510   : > { %4392 = vst [vmem:[#allocation8_spill] sm:$0xff] %v4102_v58  ;;  %v1965_v21 = vmul.f32 1.442695, %v4099_v43  ;;  %v1967_v26 = vmul.f32 1.442695, %v4102_v58  ;;  %v4107_v3 = vsub.f32 %v4393_v4, %v1784_v37  ;;  %v4110_v13 = vsub.f32 %v4394_v25, %v1784_v37  ;;  %2056 = vadd.xlane.f32.xlu1 %v2055_v16  ;;  %v4396_v37 = vld [vmem:[#allocation12_spill] sm:$0xff] }
 0x511   : > { %v2058_v55 = vadd.f32 %v2951_v60, %v2949_v56 }
 0x512   : > { %4395 = vst [vmem:[#allocation9_spill] sm:$0xff] %v4110_v13  ;;  %2960 = vpow2.f32 %v1965_v21  ;;  %v1969_v15 = vmul.f32 1.442695, %v4107_v3  ;;  %v1971_v14 = vmul.f32 1.442695, %v4110_v13 }
 0x513   : > { %2962 = vpow2.f32 %v1967_v26  ;;  %2059 = vadd.xlane.f32.xlu0 %v2058_v55 }
 0x514   : > { %v2953_v30 = vpop.eup %2952  ;;  %2964 = vpow2.f32 %v1969_v15  ;;  %v4398_v15 = vld [vmem:[#allocation13_spill] sm:$0xff] }
 0x515   : > { %v2955_v34 = vpop.eup %2954  ;;  %2966 = vpow2.f32 %v1971_v14  ;;  %v1787_v41 = vpop.xlane.xlu1 %1786 }
 0x516   : > { %v2957_v58 = vpop.eup %2956  ;;  %v4115_v4 = vsub.f32 %v3859_v18, %v1787_v41  ;;  %v4118_v25 = vsub.f32 %v4396_v37, %v1787_v41  ;;  %v2061_v56 = vadd.f32 %v2955_v34, %v2953_v30 }
 0x517   : > { %v2959_v16 = vpop.eup %2958  ;;  %v1790_v60 = vpop.xlane.xlu0 %1789 }
 0x518   : > { %4397 = vst [vmem:[#allocation10_spill] sm:$0xff] %v4118_v25  ;;  %v1973_v21 = vmul.f32 1.442695, %v4115_v4  ;;  %v1975_v26 = vmul.f32 1.442695, %v4118_v25  ;;  %v4123_v55 = vsub.f32 %v3865_v36, %v1790_v60  ;;  %v4126_v14 = vsub.f32 %v4398_v15, %v1790_v60  ;;  %2062 = vadd.xlane.f32.xlu1 %v2061_v56 }
 0x519   : > { %v2064_v13 = vadd.f32 %v2959_v16, %v2957_v58 }
 0x51a   : > { %2968 = vpow2.f32 %v1973_v21  ;;  %v1977_v18 = vmul.f32 1.442695, %v4123_v55  ;;  %v1979_v41 = vmul.f32 1.442695, %v4126_v14 }
 0x51b   : > { %2970 = vpow2.f32 %v1975_v26  ;;  %2065 = vadd.xlane.f32.xlu0 %v2064_v13 }
 0x51c   : > { %v2961_v30 = vpop.eup %2960  ;;  %2972 = vpow2.f32 %v1977_v18 }
 0x51d   : > { %v2963_v34 = vpop.eup %2962  ;;  %2974 = vpow2.f32 %v1979_v41  ;;  %v1793_v37 = vpop.xlane.xlu1 %1792 }
 0x51e   : > { %v2965_v25 = vpop.eup %2964  ;;  %v4131_v36 = vsub.f32 %v3875_v53, %v1793_v37  ;;  %v4134_v60 = vsub.f32 %v3878_v42, %v1793_v37  ;;  %v2067_v58 = vadd.f32 %v2963_v34, %v2961_v30 }
 0x51f   : > { %v2967_v56 = vpop.eup %2966  ;;  %v1796_v16 = vpop.xlane.xlu0 %1795 }
 0x520   : > { %v1981_v21 = vmul.f32 1.442695, %v4131_v36  ;;  %v1983_v26 = vmul.f32 1.442695, %v4134_v60  ;;  %v4139_v13 = vsub.f32 %v3881_v32, %v1796_v16  ;;  %v4142_v15 = vsub.f32 %v3884_v8, %v1796_v16  ;;  %2068 = vadd.xlane.f32.xlu1 %v2067_v58 }
 0x521   : > { %v2070_v18 = vadd.f32 %v2967_v56, %v2965_v25 }
 0x522   : > { %2976 = vpow2.f32 %v1981_v21  ;;  %v1985_v53 = vmul.f32 1.442695, %v4139_v13  ;;  %v1987_v42 = vmul.f32 1.442695, %v4142_v15 }
 0x523   : > { %2978 = vpow2.f32 %v1983_v26  ;;  %2071 = vadd.xlane.f32.xlu0 %v2070_v18 }
 0x524   : > { %v2969_v41 = vpop.eup %2968  ;;  %2980 = vpow2.f32 %v1985_v53 }
 0x525   : > { %v2971_v30 = vpop.eup %2970  ;;  %2982 = vpow2.f32 %v1987_v42 }
 0x526   : > { %v2973_v34 = vpop.eup %2972  ;;  %v2073_v37 = vadd.f32 %v2971_v30, %v2969_v41 }
 0x527   : > { %v2975_v32 = vpop.eup %2974 }
 0x528   : > { %2074 = vadd.xlane.f32.xlu1 %v2073_v37  ;;  %v2076_v8 = vadd.f32 %v2975_v32, %v2973_v34 }
 0x52a   : > { %2077 = vadd.xlane.f32.xlu0 %v2076_v8  ;;  %v4399_v8 = vld [vmem:[#allocation14_spill] sm:$0xff] }
 0x52c   : > { %v2977_v25 = vpop.eup %2976 }
 0x52d   : > { %v2979_v58 = vpop.eup %2978 }
 0x52e   : > { %v2981_v56 = vpop.eup %2980  ;;  %v2079_v16 = vadd.f32 %v2979_v58, %v2977_v25 }
 0x52f   : > { %v2983_v21 = vpop.eup %2982 }
 0x530   : > { %2080 = vadd.xlane.f32.xlu1 %v2079_v16  ;;  %v2082_v26 = vadd.f32 %v2983_v21, %v2981_v56  ;;  %v4400_v21 = vld [vmem:[#allocation15_spill] sm:$0xff] }
 0x532   : > { %2083 = vadd.xlane.f32.xlu0 %v2082_v26 }
 0x545   : > { %v1991_v18 = vpop.xlane.xlu1 %1990 }
 0x546   : > { %2984 = vlog2.f32 %v1991_v18 }
 0x548   : > { %v1994_v53 = vpop.xlane.xlu0 %1993 }
 0x549   : > { %2986 = vlog2.f32 %v1994_v53 }
 0x54d   : > { %v1997_v42 = vpop.xlane.xlu1 %1996 }
 0x54e   : > { %2988 = vlog2.f32 %v1997_v42  ;;  %v4401_v42 = vld [vmem:[#allocation16_spill] sm:$0xff] }
 0x550   : > { %v2985_v41 = vpop.eup %2984 }
 0x551   : > { %v2086_v30 = vmul.f32 0.6931472, %v2985_v41  ;;  %v2000_v34 = vpop.xlane.xlu0 %1999 }
 0x552   : > { %2990 = vlog2.f32 %v2000_v34 }
 0x553   : > { %v2987_v37 = vpop.eup %2986  ;;  %v2149_v32 = vsub.f32 %v3891_v52, %v2086_v30  ;;  %v2150_v25 = vsub.f32 %v4399_v8, %v2086_v30  ;;  %v4402_v30 = vld [vmem:[#allocation17_spill] sm:$0xff]  ;;  %v4403_v8 = vld [vmem:[#allocation18_spill] sm:$0xff] }
 0x554   : > { %v2088_v58 = vmul.f32 0.6931472, %v2987_v37 }
 0x555   : > { %2213 = vst [vmem:[%s4151_s23] sm:$0xff] %v2149_v32  ;;  %2214 = vst [vmem:[%s4151_s23 + $0x8] sm:$0xff] %v2150_v25  ;;  %v2003_v56 = vpop.xlane.xlu1 %2002 }
 0x556   : > { %v2151_v16 = vsub.f32 %v3899_v12, %v2088_v58  ;;  %v2152_v26 = vsub.f32 %v4400_v21, %v2088_v58  ;;  %2992 = vlog2.f32 %v2003_v56  ;;  %v4404_v58 = vld [vmem:[#allocation19_spill] sm:$0xff] }
 0x558   : > { %v2989_v52 = vpop.eup %2988  ;;  %2215 = vst [vmem:[%s4151_s23 + $0x10] sm:$0xff] %v2151_v16  ;;  %2216 = vst [vmem:[%s4151_s23 + $0x18] sm:$0xff] %v2152_v26  ;;  %v2006_v18 = vpop.xlane.xlu0 %2005 }
 0x559   : > { %v2090_v53 = vmul.f32 0.6931472, %v2989_v52  ;;  %2994 = vlog2.f32 %v2006_v18 }
 0x55b   : > { %v2153_v41 = vsub.f32 %v4401_v42, %v2090_v53  ;;  %v2154_v34 = vsub.f32 %v4402_v30, %v2090_v53 }
 0x55c   : > { %v2991_v37 = vpop.eup %2990 }
 0x55d   : > { %2217 = vst [vmem:[%s4151_s23 + $0x20] sm:$0xff] %v2153_v41  ;;  %2218 = vst [vmem:[%s4151_s23 + $0x28] sm:$0xff] %v2154_v34  ;;  %v2092_v12 = vmul.f32 0.6931472, %v2991_v37  ;;  %v2009_v32 = vpop.xlane.xlu1 %2008 }
 0x55e   : > { %2996 = vlog2.f32 %v2009_v32 }
 0x55f   : > { %v2155_v25 = vsub.f32 %v4403_v8, %v2092_v12  ;;  %v2156_v56 = vsub.f32 %v4404_v58, %v2092_v12  ;;  %v4405_v58 = vld [vmem:[#allocation20_spill] sm:$0xff] }
 0x560   : > { %v2993_v16 = vpop.eup %2992  ;;  %v2012_v21 = vpop.xlane.xlu0 %2011 }
 0x561   : > { %2219 = vst [vmem:[%s4151_s23 + $0x30] sm:$0xff] %v2155_v25  ;;  %2220 = vst [vmem:[%s4151_s23 + $0x38] sm:$0xff] %v2156_v56  ;;  %v2094_v26 = vmul.f32 0.6931472, %v2993_v16  ;;  %2998 = vlog2.f32 %v2012_v21 }
 0x563   : > { %v2995_v52 = vpop.eup %2994  ;;  %v2157_v18 = vsub.f32 %v3923_v1, %v2094_v26  ;;  %v2158_v53 = vsub.f32 %v3926_v50, %v2094_v26 }
 0x564   : > { %v2096_v42 = vmul.f32 0.6931472, %v2995_v52 }
 0x565   : > { %2221 = vst [vmem:[%s4151_s23 + $0x40] sm:$0xff] %v2157_v18  ;;  %2222 = vst [vmem:[%s4151_s23 + $0x48] sm:$0xff] %v2158_v53  ;;  %v2015_v41 = vpop.xlane.xlu1 %2014 }
 0x566   : > { %v2159_v30 = vsub.f32 %v3931_v24, %v2096_v42  ;;  %v2160_v34 = vsub.f32 %v3934_v27, %v2096_v42  ;;  %3000 = vlog2.f32 %v2015_v41 }
 0x568   : > { %v2997_v37 = vpop.eup %2996  ;;  %2223 = vst [vmem:[%s4151_s23 + $0x50] sm:$0xff] %v2159_v30  ;;  %2224 = vst [vmem:[%s4151_s23 + $0x58] sm:$0xff] %v2160_v34  ;;  %v2018_v12 = vpop.xlane.xlu0 %2017 }
 0x569   : > { %v2098_v1 = vmul.f32 0.6931472, %v2997_v37  ;;  %3002 = vlog2.f32 %v2018_v12 }
 0x56b   : > { %v2999_v50 = vpop.eup %2998  ;;  %v2161_v32 = vsub.f32 %v3939_v48, %v2098_v1  ;;  %v2162_v8 = vsub.f32 %v3942_v51, %v2098_v1 }
 0x56c   : > { %v2100_v25 = vmul.f32 0.6931472, %v2999_v50 }
 0x56d   : > { %2225 = vst [vmem:[%s4151_s23 + $0x60] sm:$0xff] %v2161_v32  ;;  %2226 = vst [vmem:[%s4151_s23 + $0x68] sm:$0xff] %v2162_v8  ;;  %v2021_v27 = vpop.xlane.xlu1 %2020 }
 0x56e   : > { %v2163_v24 = vsub.f32 %v3947_v29, %v2100_v25  ;;  %v2164_v56 = vsub.f32 %v4405_v58, %v2100_v25  ;;  %3004 = vlog2.f32 %v2021_v27 }
 0x570   : > { %v3001_v16 = vpop.eup %3000  ;;  %2227 = vst [vmem:[%s4151_s23 + $0x70] sm:$0xff] %v2163_v24  ;;  %2228 = vst [vmem:[%s4151_s23 + $0x78] sm:$0xff] %v2164_v56  ;;  %v2024_v21 = vpop.xlane.xlu0 %2023 }
 0x571   : > { %v2102_v48 = vmul.f32 0.6931472, %v3001_v16  ;;  %3006 = vlog2.f32 %v2024_v21 }
 0x573   : > { %v3003_v51 = vpop.eup %3002  ;;  %v2165_v26 = vsub.f32 %v3955_v35, %v2102_v48  ;;  %v2166_v52 = vsub.f32 %v3958_v61, %v2102_v48 }
 0x574   : > { %v2104_v18 = vmul.f32 0.6931472, %v3003_v51 }
 0x575   : > { %2229 = vst [vmem:[%s4151_s23 + $0x80] sm:$0xff] %v2165_v26  ;;  %2230 = vst [vmem:[%s4151_s23 + $0x88] sm:$0xff] %v2166_v52  ;;  %v2027_v29 = vpop.xlane.xlu1 %2026 }
 0x576   : > { %v2167_v53 = vsub.f32 %v3963_v39, %v2104_v18  ;;  %v2168_v42 = vsub.f32 %v3966_v44, %v2104_v18  ;;  %3008 = vlog2.f32 %v2027_v29 }
 0x578   : > { %v3005_v41 = vpop.eup %3004  ;;  %2231 = vst [vmem:[%s4151_s23 + $0x90] sm:$0xff] %v2167_v53  ;;  %2232 = vst [vmem:[%s4151_s23 + $0x98] sm:$0xff] %v2168_v42  ;;  %v2030_v30 = vpop.xlane.xlu0 %2029 }
 0x579   : > { %v2106_v35 = vmul.f32 0.6931472, %v3005_v41  ;;  %3010 = vlog2.f32 %v2030_v30 }
 0x57b   : > { %v3007_v61 = vpop.eup %3006  ;;  %v2169_v34 = vsub.f32 %v3971_v10, %v2106_v35  ;;  %v2170_v37 = vsub.f32 %v3974_v11, %v2106_v35 }
 0x57c   : > { %v2108_v12 = vmul.f32 0.6931472, %v3007_v61 }
 0x57d   : > { %2233 = vst [vmem:[%s4151_s23 + $0xa0] sm:$0xff] %v2169_v34  ;;  %2234 = vst [vmem:[%s4151_s23 + $0xa8] sm:$0xff] %v2170_v37  ;;  %v2033_v39 = vpop.xlane.xlu1 %2032 }
 0x57e   : > { %v2171_v44 = vsub.f32 %v3979_v38, %v2108_v12  ;;  %v2172_v1 = vsub.f32 %v3982_v9, %v2108_v12  ;;  %3012 = vlog2.f32 %v2033_v39 }
 0x580   : > { %v3009_v50 = vpop.eup %3008  ;;  %2235 = vst [vmem:[%s4151_s23 + $0xb0] sm:$0xff] %v2171_v44  ;;  %2236 = vst [vmem:[%s4151_s23 + $0xb8] sm:$0xff] %v2172_v1  ;;  %v2036_v32 = vpop.xlane.xlu0 %2035 }
 0x581   : > { %v2110_v10 = vmul.f32 0.6931472, %v3009_v50  ;;  %3014 = vlog2.f32 %v2036_v32 }
 0x583   : > { %v3011_v11 = vpop.eup %3010  ;;  %v2173_v8 = vsub.f32 %v3987_v19, %v2110_v10  ;;  %v2174_v25 = vsub.f32 %v3990_v2, %v2110_v10 }
 0x584   : > { %v2112_v27 = vmul.f32 0.6931472, %v3011_v11 }
 0x585   : > { %2237 = vst [vmem:[%s4151_s23 + $0xc0] sm:$0xff] %v2173_v8  ;;  %2238 = vst [vmem:[%s4151_s23 + $0xc8] sm:$0xff] %v2174_v25  ;;  %v2039_v38 = vpop.xlane.xlu1 %2038 }
 0x586   : > { %v2175_v9 = vsub.f32 %v3995_v0, %v2112_v27  ;;  %v2176_v24 = vsub.f32 %v3998_v54, %v2112_v27  ;;  %3016 = vlog2.f32 %v2039_v38  ;;  %v4406_v38 = vld [vmem:[#allocation21_spill] sm:$0xff] }
 0x588   : > { %v3013_v58 = vpop.eup %3012  ;;  %2239 = vst [vmem:[%s4151_s23 + $0xd0] sm:$0xff] %v2175_v9  ;;  %2240 = vst [vmem:[%s4151_s23 + $0xd8] sm:$0xff] %v2176_v24  ;;  %v2042_v56 = vpop.xlane.xlu0 %2041 }
 0x589   : > { %v2114_v19 = vmul.f32 0.6931472, %v3013_v58  ;;  %3018 = vlog2.f32 %v2042_v56  ;;  %v4407_v56 = vld [vmem:[#allocation22_spill] sm:$0xff] }
 0x58b   : > { %v3015_v2 = vpop.eup %3014  ;;  %v2177_v16 = vsub.f32 %v4003_v28, %v2114_v19  ;;  %v2178_v21 = vsub.f32 %v4006_v31, %v2114_v19 }
 0x58c   : > { %v2116_v48 = vmul.f32 0.6931472, %v3015_v2  ;;  %v4408_v2 = vld [vmem:[#allocation5_spill] sm:$0xff] }
 0x58d   : > { %2241 = vst [vmem:[%s4151_s23 + $0xe0] sm:$0xff] %v2177_v16  ;;  %2242 = vst [vmem:[%s4151_s23 + $0xe8] sm:$0xff] %v2178_v21  ;;  %v2045_v0 = vpop.xlane.xlu1 %2044 }
 0x58e   : > { %v2179_v54 = vsub.f32 %v4011_v22, %v2116_v48  ;;  %v2180_v51 = vsub.f32 %v4014_v59, %v2116_v48  ;;  %3020 = vlog2.f32 %v2045_v0  ;;  %v4409_v48 = vld [vmem:[#allocation6_spill] sm:$0xff] }
 0x590   : > { %v3017_v26 = vpop.eup %3016  ;;  %2243 = vst [vmem:[%s4151_s23 + $0xf0] sm:$0xff] %v2179_v54  ;;  %2244 = vst [vmem:[%s4151_s23 + $0xf8] sm:$0xff] %v2180_v51  ;;  %v2048_v52 = vpop.xlane.xlu0 %2047  ;;  %v4410_v54 = vld [vmem:[#allocation7_spill] sm:$0xff] }
 0x591   : > { %v2118_v28 = vmul.f32 0.6931472, %v3017_v26  ;;  %3022 = vlog2.f32 %v2048_v52 }
 0x593   : > { %v3019_v31 = vpop.eup %3018  ;;  %v2181_v18 = vsub.f32 %v4019_v45, %v2118_v28  ;;  %v2182_v29 = vsub.f32 %v4022_v49, %v2118_v28 }
 0x594   : > { %v2120_v53 = vmul.f32 0.6931472, %v3019_v31 }
 0x595   : > { %2245 = vst [vmem:[%s4151_s23 + $0x100] sm:$0xff] %v2181_v18  ;;  %2246 = vst [vmem:[%s4151_s23 + $0x108] sm:$0xff] %v2182_v29  ;;  %v2051_v22 = vpop.xlane.xlu1 %2050  ;;  %v4411_v29 = vld [vmem:[#allocation8_spill] sm:$0xff] }
 0x596   : > { %v2183_v59 = vsub.f32 %v4027_v33, %v2120_v53  ;;  %v2184_v42 = vsub.f32 %v4030_v23, %v2120_v53  ;;  %3024 = vlog2.f32 %v2051_v22 }
 0x598   : > { %v3021_v41 = vpop.eup %3020  ;;  %2247 = vst [vmem:[%s4151_s23 + $0x110] sm:$0xff] %v2183_v59  ;;  %2248 = vst [vmem:[%s4151_s23 + $0x118] sm:$0xff] %v2184_v42  ;;  %v2054_v30 = vpop.xlane.xlu0 %2053 }
 0x599   : > { %v2122_v45 = vmul.f32 0.6931472, %v3021_v41  ;;  %3026 = vlog2.f32 %v2054_v30  ;;  %v4412_v41 = vld [vmem:[#allocation9_spill] sm:$0xff] }
 0x59b   : > { %v3023_v49 = vpop.eup %3022  ;;  %v2185_v35 = vsub.f32 %v4035_v63, %v2122_v45  ;;  %v2186_v61 = vsub.f32 %v4038_v5, %v2122_v45 }
 0x59c   : > { %v2124_v34 = vmul.f32 0.6931472, %v3023_v49 }
 0x59d   : > { %2249 = vst [vmem:[%s4151_s23 + $0x120] sm:$0xff] %v2185_v35  ;;  %2250 = vst [vmem:[%s4151_s23 + $0x128] sm:$0xff] %v2186_v61  ;;  %v2057_v33 = vpop.xlane.xlu1 %2056 }
 0x59e   : > { %v2187_v23 = vsub.f32 %v4043_v46, %v2124_v34  ;;  %v2188_v37 = vsub.f32 %v4046_v62, %v2124_v34  ;;  %3028 = vlog2.f32 %v2057_v33  ;;  %v4413_v34 = vld [vmem:[#allocation10_spill] sm:$0xff] }
 0x5a0   : > { %v3025_v12 = vpop.eup %3024  ;;  %2251 = vst [vmem:[%s4151_s23 + $0x130] sm:$0xff] %v2187_v23  ;;  %2252 = vst [vmem:[%s4151_s23 + $0x138] sm:$0xff] %v2188_v37  ;;  %v2060_v39 = vpop.xlane.xlu0 %2059 }
 0x5a1   : > { %v2126_v63 = vmul.f32 0.6931472, %v3025_v12  ;;  %3030 = vlog2.f32 %v2060_v39 }
 0x5a3   : > { %v3027_v5 = vpop.eup %3026  ;;  %v2189_v44 = vsub.f32 %v4051_v20, %v2126_v63  ;;  %v2190_v1 = vsub.f32 %v4054_v6, %v2126_v63 }
 0x5a4   : > { %v2128_v50 = vmul.f32 0.6931472, %v3027_v5 }
 0x5a5   : > { %2253 = vst [vmem:[%s4151_s23 + $0x140] sm:$0xff] %v2189_v44  ;;  %2254 = vst [vmem:[%s4151_s23 + $0x148] sm:$0xff] %v2190_v1  ;;  %v2063_v46 = vpop.xlane.xlu1 %2062 }
 0x5a6   : > { %v2191_v62 = vsub.f32 %v4059_v7, %v2128_v50  ;;  %v2192_v32 = vsub.f32 %v4062_v57, %v2128_v50  ;;  %3032 = vlog2.f32 %v2063_v46 }
 0x5a8   : > { %v3029_v10 = vpop.eup %3028  ;;  %2255 = vst [vmem:[%s4151_s23 + $0x150] sm:$0xff] %v2191_v62  ;;  %2256 = vst [vmem:[%s4151_s23 + $0x158] sm:$0xff] %v2192_v32  ;;  %v2066_v11 = vpop.xlane.xlu0 %2065 }
 0x5a9   : > { %v2130_v20 = vmul.f32 0.6931472, %v3029_v10  ;;  %3034 = vlog2.f32 %v2066_v11 }
 0x5ab   : > { %v3031_v6 = vpop.eup %3030  ;;  %v2193_v8 = vsub.f32 %v4067_v40, %v2130_v20  ;;  %v2194_v25 = vsub.f32 %v4070_v47, %v2130_v20 }
 0x5ac   : > { %v2132_v27 = vmul.f32 0.6931472, %v3031_v6 }
 0x5ad   : > { %2257 = vst [vmem:[%s4151_s23 + $0x160] sm:$0xff] %v2193_v8  ;;  %2258 = vst [vmem:[%s4151_s23 + $0x168] sm:$0xff] %v2194_v25  ;;  %v2069_v7 = vpop.xlane.xlu1 %2068 }
 0x5ae   : > { %v2195_v57 = vsub.f32 %v4075_v17, %v2132_v27  ;;  %v2196_v9 = vsub.f32 %v4406_v38, %v2132_v27  ;;  %3036 = vlog2.f32 %v2069_v7 }
 0x5b0   : > { %v3033_v24 = vpop.eup %3032  ;;  %2259 = vst [vmem:[%s4151_s23 + $0x170] sm:$0xff] %v2195_v57  ;;  %2260 = vst [vmem:[%s4151_s23 + $0x178] sm:$0xff] %v2196_v9  ;;  %v2072_v58 = vpop.xlane.xlu0 %2071 }
 0x5b1   : > { %v2134_v40 = vmul.f32 0.6931472, %v3033_v24  ;;  %3038 = vlog2.f32 %v2072_v58 }
 0x5b3   : > { %v3035_v47 = vpop.eup %3034  ;;  %v2197_v19 = vsub.f32 %v4407_v56, %v2134_v40  ;;  %v2198_v16 = vsub.f32 %v4408_v2, %v2134_v40 }
 0x5b4   : > { %v2136_v21 = vmul.f32 0.6931472, %v3035_v47 }
 0x5b5   : > { %2261 = vst [vmem:[%s4151_s23 + $0x180] sm:$0xff] %v2197_v19  ;;  %2262 = vst [vmem:[%s4151_s23 + $0x188] sm:$0xff] %v2198_v16  ;;  %v2075_v17 = vpop.xlane.xlu1 %2074 }
 0x5b6   : > { %v2199_v0 = vsub.f32 %v4409_v48, %v2136_v21  ;;  %v2200_v51 = vsub.f32 %v4410_v54, %v2136_v21  ;;  %3040 = vlog2.f32 %v2075_v17 }
 0x5b7   : > { %v2078_v26 = vpop.xlane.xlu0 %2077 }
 0x5b8   : > { %v3037_v52 = vpop.eup %3036  ;;  %2263 = vst [vmem:[%s4151_s23 + $0x190] sm:$0xff] %v2199_v0  ;;  %2264 = vst [vmem:[%s4151_s23 + $0x198] sm:$0xff] %v2200_v51  ;;  %3042 = vlog2.f32 %v2078_v26 }
 0x5b9   : > { %v2138_v28 = vmul.f32 0.6931472, %v3037_v52 }
 0x5bb   : > { %v3039_v31 = vpop.eup %3038  ;;  %v2201_v18 = vsub.f32 %v4099_v43, %v2138_v28  ;;  %v2202_v53 = vsub.f32 %v4411_v29, %v2138_v28 }
 0x5bc   : > { %v2140_v22 = vmul.f32 0.6931472, %v3039_v31 }
 0x5bd   : > { %2265 = vst [vmem:[%s4151_s23 + $0x1a0] sm:$0xff] %v2201_v18  ;;  %2266 = vst [vmem:[%s4151_s23 + $0x1a8] sm:$0xff] %v2202_v53  ;;  %v2081_v59 = vpop.xlane.xlu1 %2080 }
 0x5be   : > { %v2203_v42 = vsub.f32 %v4107_v3, %v2140_v22  ;;  %v2204_v30 = vsub.f32 %v4412_v41, %v2140_v22  ;;  %3044 = vlog2.f32 %v2081_v59 }
 0x5bf   : > { %v2084_v45 = vpop.xlane.xlu0 %2083 }
 0x5c0   : > { %v3041_v49 = vpop.eup %3040  ;;  %2267 = vst [vmem:[%s4151_s23 + $0x1b0] sm:$0xff] %v2203_v42  ;;  %2268 = vst [vmem:[%s4151_s23 + $0x1b8] sm:$0xff] %v2204_v30  ;;  %3046 = vlog2.f32 %v2084_v45 }
 0x5c1   : > { %v2142_v43 = vmul.f32 0.6931472, %v3041_v49 }
 0x5c2   : > { %v3043_v35 = vpop.eup %3042 }
 0x5c3   : > { %v2205_v61 = vsub.f32 %v4115_v4, %v2142_v43  ;;  %v2206_v33 = vsub.f32 %v4413_v34, %v2142_v43  ;;  %v2144_v23 = vmul.f32 0.6931472, %v3043_v35 }
 0x5c5   : > { %2269 = vst [vmem:[%s4151_s23 + $0x1c0] sm:$0xff] %v2205_v61  ;;  %2270 = vst [vmem:[%s4151_s23 + $0x1c8] sm:$0xff] %v2206_v33  ;;  %v2207_v3 = vsub.f32 %v4123_v55, %v2144_v23  ;;  %v2208_v37 = vsub.f32 %v4126_v14, %v2144_v23 }
 0x5c7   : > { %2271 = vst [vmem:[%s4151_s23 + $0x1d0] sm:$0xff] %v2207_v3  ;;  %2272 = vst [vmem:[%s4151_s23 + $0x1d8] sm:$0xff] %v2208_v37 }
 0x5c8   : > { %v3045_v12 = vpop.eup %3044 }
 0x5c9   : > { %v2146_v39 = vmul.f32 0.6931472, %v3045_v12 }
 0x5ca   : > { %v3047_v4 = vpop.eup %3046 }
 0x5cb   : > { %v2209_v63 = vsub.f32 %v4131_v36, %v2146_v39  ;;  %v2210_v5 = vsub.f32 %v4134_v60, %v2146_v39  ;;  %v2148_v44 = vmul.f32 0.6931472, %v3047_v4 }
 0x5cd   : > { %2273 = vst [vmem:[%s4151_s23 + $0x1e0] sm:$0xff] %v2209_v63  ;;  %2274 = vst [vmem:[%s4151_s23 + $0x1e8] sm:$0xff] %v2210_v5  ;;  %v2211_v55 = vsub.f32 %v4139_v13, %v2148_v44  ;;  %v2212_v14 = vsub.f32 %v4142_v15, %v2148_v44 }
 0x5cf   : > { %2275 = vst [vmem:[%s4151_s23 + $0x1f0] sm:$0xff] %v2211_v55  ;;  %2276 = vst [vmem:[%s4151_s23 + $0x1f8] sm:$0xff] %v2212_v14 }
 0x5d0   : > { %3061 = shalt.err (!%p3058_p3)
}
 0x5d1   : > { %s3062_s20 = scalar_lea.hbm %s4278_s12, 8192  ;;  %s3066_s23 = scalar_lea.hbm %s4339_s8, 16384 }
 0x5d2   : > { %p3063_p4 = scmp.ne.s32.totalorder %s4278_s12, %s3062_s20  ;;  %p3067_p9 = scmp.lt.u32.totalorder %s4278_s12, %s4339_s8 }
 0x5d3   : > { %p3068_p10 = scmp.lt.u32.totalorder %s3066_s23, %s3062_s20  ;;  %p3070_p12 = scmp.lt.u32.totalorder %s3062_s20, %s4278_s12 }
 0x5d4   : > { %p3064_p7 = pnand %p3063_p4, %p3200_p5 }
 0x5d5   : > { %p3069_p11 = por %p3068_p10, %p3067_p9 }
 0x5d6   : > { %p3065_p8 = pneg %p3064_p7 }
 0x5d7   : > { %p3071_p13 = por %p3070_p12, %p3069_p11 }
 0x5d9   : > { %p3072_p0 = pnand %p3071_p13, %p3065_p8 }
 0x5db   : > { %3075 = shalt.err (!%p3072_p0)
}
 0x5dc   : > { %s3115_s10 = smov 256   ;;  %s3116_s18 = smov 16  }
 0x5dd   : > { %2755 = dma.vmem_to_hbm [thread:$0]  (%p3200_p5), %s4280_s25, 8192, %s4278_s12, %s4290_s9, %s3115_s10, %s3115_s10, %s3116_s18  }
 0x5de PF: > { %p2761_p1 = scmp.ge.s32.totalorder %s3110_s30, 2  ;;  %s2307_s19 = sand.u32 1, %s3098_s27  }
 0x5df   : > { %s2308_s13 = scalar_lea.sflag [#allocation3], %s2307_s19 }
 0x5e0   : > { %p2758_p2 = pnand %p2761_p1, %p3204_p6 }
 0x5e2   : > { %3093 = dma.done.wait (!%p2758_p2), %s2308_s13, 8192  }
 0x5e3   : > { %3095 = vsyncadd (!%p2758_p2), %s2308_s13, 4294959104  ;;  %p18_p3 = scmp.ge.s32.totalorder %s3187_s11, 4   ;;  %s4414_s27 = smov %s3102_s28 }
 0x5e4   : > { %s4415_s28 = smov %s3106_s29  ;;  %s4416_s29 = smov %s3198_s14 }
 0x5e5   : > { %s4417_s30 = smov %s3187_s11  ;;  %20 = sbr.rel (!%p18_p3) target bundleno = 3 (0x3), region = 87 }
 0x5ec   :  { %2313 = vsyncpa [#allocation3], 1 }
 0x5ed   :  { %2315 = vsyncpa [#allocation3 + $0x1], 1 }

</bundles_post_ra>
